<compile_context>
chip_gen: v5e
topology: v5e:2x2
jax: 0.10.0
libtpu: 0.0.40
codegen_flags: <defaults>
</compile_context>

<pallas_src>
import functools

import jax
import jax.numpy as jnp
from jax.experimental import pallas as pl
from jax.experimental.pallas import tpu as pltpu


def _lstm_gate_combine(gates, c_prev, hidden):
    """gates: (B, 4H) pre-activations in PyTorch order i|f|g|o."""
    H = hidden
    sig = jax.nn.sigmoid(gates)       # one full-vreg EUP pass
    th = jnp.tanh(gates)              # one full-vreg EUP pass
    i_g = sig[:, 0 * H:1 * H]
    f_g = sig[:, 1 * H:2 * H]
    g_g = th[:, 2 * H:3 * H]
    o_g = sig[:, 3 * H:4 * H]
    c_new = f_g * c_prev + i_g * g_g
    h_new = o_g * jnp.tanh(c_new)
    return h_new, c_new


def _charrnn_chunk_kernel(tok_ref, table0_ref, b0_ref, whh_ref, wih_ref,
                          brest_ref, wo_ref, bo_ref, h0_ref, c0_ref,
                          out_ref, hn_ref, cn_ref,
                          xg0_ref, hs_ref,
                          *, n_layers, vocab, chunk, batch, hidden):
    """One grid step == CHUNK LSTM time steps. h/c carried in hn_ref/cn_ref."""
    t = pl.program_id(0)
    H = hidden
    CB = chunk * batch

    @pl.when(t == 0)
    def _():
        hn_ref[...] = h0_ref[...]
        cn_ref[...] = c0_ref[...]

    # ---- batched embedding lookup + layer-0 input matmul for whole chunk ---
    # one-hot (CB, V) @ table0 (V, 4H); table0 already folds W_ih of layer 0.
    tok = tok_ref[...]                                          # (CB, 1) int32
    onehot = (jax.lax.broadcasted_iota(jnp.int32, (CB, vocab), 1)
              == tok).astype(jnp.float32)                       # (CB, V)
    xg0_ref[...] = (jnp.dot(onehot, table0_ref[...],
                            preferred_element_type=jnp.float32)
                    + b0_ref[...])                              # (CB, 4H)

    # ---- sequential recurrence over the chunk; states live in vregs --------
    h_st = [hn_ref[l] for l in range(n_layers)]
    c_st = [cn_ref[l] for l in range(n_layers)]
    for s in range(chunk):                       # short static unroll
        row = s * batch
        # layer 0: input contribution precomputed; only h @ W_hh on the path.
        gates = (xg0_ref[pl.ds(row, batch), :]
                 + jnp.dot(h_st[0], whh_ref[0],
                           preferred_element_type=jnp.float32))
        h_st[0], c_st[0] = _lstm_gate_combine(gates, c_st[0], H)
        x = h_st[0]
        # deeper layers: x@W_ih + h@W_hh (no concat), fused 4H=128 gate width.
        for l in range(1, n_layers):
            gates = (jnp.dot(x, wih_ref[l - 1],
                             preferred_element_type=jnp.float32)
                     + jnp.dot(h_st[l], whh_ref[l],
                               preferred_element_type=jnp.float32)
                     + brest_ref[l - 1])
            h_st[l], c_st[l] = _lstm_gate_combine(gates, c_st[l], H)
            x = h_st[l]
        hs_ref[pl.ds(row, batch), :] = x         # collect final-layer h

    for l in range(n_layers):
        hn_ref[l] = h_st[l]
        cn_ref[l] = c_st[l]

    # ---- ONE batched, lane-dense h2o projection per chunk ------------------
    out_ref[...] = (jnp.dot(hs_ref[...], wo_ref[...],
                            preferred_element_type=jnp.float32)
                    + bo_ref[...])


def prepare_params(params, *, hidden_size, output_size):
    """Pre-transpose / fold / pad weights into the kernel layout."""
    H = hidden_size
    hp = jax.lax.Precision.HIGHEST
    w_ih = params["w_ih"].astype(jnp.float32)          # (L, 4H, H)
    w_hh = params["w_hh"].astype(jnp.float32)          # (L, 4H, H)
    L = w_ih.shape[0]
    # Layer-0 input path folded into the embedding: table0[v] = E[v] @ W_ih0^T
    table0 = jnp.dot(params["embed"].astype(jnp.float32), w_ih[0].T,
                     precision=hp)                      # (V, 4H)
    b0 = (params["b_ih"][0] + params["b_hh"][0]).reshape(1, 4 * H)
    # Recurrent weights for all layers, pre-transposed to (H, 4H).
    w_hh_t = jnp.transpose(w_hh, (0, 2, 1))             # (L, H, 4H)
    if L > 1:
        w_ih_rest = jnp.transpose(w_ih[1:], (0, 2, 1))  # (L-1, H, 4H)
        b_rest = (params["b_ih"][1:] + params["b_hh"][1:]
                  ).reshape(L - 1, 1, 4 * H)
    else:  # dummy (never read) so the kernel signature stays fixed
        w_ih_rest = jnp.zeros((1, H, 4 * H), jnp.float32)
        b_rest = jnp.zeros((1, 1, 4 * H), jnp.float32)
    # Lane-dense output projection (pad columns to a multiple of 128).
    OP = ((output_size + 127) // 128) * 128
    w_out_t = jnp.zeros((H, OP), jnp.float32).at[:, :output_size].set(
        params["w_out"].astype(jnp.float32).T)
    b_out = jnp.zeros((1, OP), jnp.float32).at[:, :output_size].set(
        params["b_out"].astype(jnp.float32).reshape(1, -1))
    return {"table0": table0, "b0": b0, "w_hh_t": w_hh_t,
            "w_ih_rest": w_ih_rest, "b_rest": b_rest,
            "w_out_t": w_out_t, "b_out": b_out}


def charrnn_forward_seq(tokens_seq, hidden_state, prep, *, n_layers,
                        hidden_size, output_size, chunk=8):
    """Fused T-step forward. tokens_seq: (T, B) int32. Returns (T,B,O), (h,c)."""
    h0, c0 = hidden_state
    T, B = tokens_seq.shape
    H = hidden_size
    V = prep["table0"].shape[0]
    OP = prep["w_out_t"].shape[1]
    chunk = min(chunk, T)
    assert T % chunk == 0, "sequence length must be divisible by the time chunk"
    n_chunks = T // chunk
    CB = chunk * B

    tok_flat = tokens_seq.reshape(T * B, 1).astype(jnp.int32)

    kernel = functools.partial(_charrnn_chunk_kernel, n_layers=n_layers,
                               vocab=V, chunk=chunk, batch=B, hidden=H)

    def full_spec(shape):
        n = len(shape)
        return pl.BlockSpec(shape, lambda i, n=n: (0,) * n)

    logits_p, h_n, c_n = pl.pallas_call(
        kernel,
        grid=(n_chunks,),
        in_specs=[
            pl.BlockSpec((CB, 1), lambda i: (i, 0)),     # token chunk
            full_spec(prep["table0"].shape),             # (V, 4H) fused table
            full_spec(prep["b0"].shape),                 # (1, 4H)
            full_spec(prep["w_hh_t"].shape),             # (L, H, 4H)
            full_spec(prep["w_ih_rest"].shape),          # (L-1, H, 4H)
            full_spec(prep["b_rest"].shape),             # (L-1, 1, 4H)
            full_spec(prep["w_out_t"].shape),            # (H, OP)
            full_spec(prep["b_out"].shape),              # (1, OP)
            full_spec(h0.shape),                         # h0 (L, B, H)
            full_spec(c0.shape),                         # c0 (L, B, H)
        ],
        out_specs=(
            pl.BlockSpec((CB, OP), lambda i: (i, 0)),    # per-chunk logits
            full_spec(h0.shape),                         # h carry / output
            full_spec(c0.shape),                         # c carry / output
        ),
        out_shape=(
            jax.ShapeDtypeStruct((T * B, OP), jnp.float32),
            jax.ShapeDtypeStruct(h0.shape, jnp.float32),
            jax.ShapeDtypeStruct(c0.shape, jnp.float32),
        ),
        scratch_shapes=[
            pltpu.VMEM((CB, 4 * H), jnp.float32),   # layer-0 input gate preacts
            pltpu.VMEM((CB, H), jnp.float32),       # final-layer h per step
        ],
        compiler_params=pltpu.CompilerParams(
            dimension_semantics=("arbitrary",)),    # time axis must stay serial
    )(tok_flat, prep["table0"], prep["b0"], prep["w_hh_t"],
      prep["w_ih_rest"], prep["b_rest"], prep["w_out_t"], prep["b_out"],
      h0, c0)

    logits = logits_p.reshape(T, B, OP)[..., :output_size]
    return logits, (h_n, c_n)


def charrnn_forward(tokens, hidden_state, prep, *, n_layers, hidden_size,
                    output_size):
    """Exact CharRNN.forward(input, hidden) semantics (one LSTM step)."""
    logits, hidden = charrnn_forward_seq(
        tokens.reshape(1, -1), hidden_state, prep, n_layers=n_layers,
        hidden_size=hidden_size, output_size=output_size, chunk=1)
    return logits[0], hidden


# -------------------------- pure-JAX reference ------------------------------

def charrnn_step_reference(tokens, hidden_state, params, *, n_layers,
                           hidden_size):
    h0, c0 = hidden_state
    H = hidden_size
    hp = jax.lax.Precision.HIGHEST
    x = params["embed"][tokens]
    h_out, c_out = [], []
    for l in range(n_layers):
        gates = (jnp.dot(x, params["w_ih"][l].T, precision=hp)
                 + params["b_ih"][l, 0]
                 + jnp.dot(h0[l], params["w_hh"][l].T, precision=hp)
                 + params["b_hh"][l, 0])
        i_g = jax.nn.sigmoid(gates[:, 0 * H:1 * H])
        f_g = jax.nn.sigmoid(gates[:, 1 * H:2 * H])
        g_g = jnp.tanh(gates[:, 2 * H:3 * H])
        o_g = jax.nn.sigmoid(gates[:, 3 * H:4 * H])
        c_new = f_g * c0[l] + i_g * g_g
        h_new = o_g * jnp.tanh(c_new)
        h_out.append(h_new)
        c_out.append(c_new)
        x = h_new
    out = jnp.dot(x, params["w_out"].T, precision=hp) + params["b_out"][0]
    return out, (jnp.stack(h_out), jnp.stack(c_out))


def init_params(key, vocab_size, hidden_size, output_size, n_layers):
    H = hidden_size
    keys = jax.random.split(key, 8)
    bound = 1.0 / jnp.sqrt(jnp.float32(H))
    return {
        "embed": jax.random.normal(keys[0], (vocab_size, H), jnp.float32),
        "w_ih": jax.random.uniform(keys[1], (n_layers, 4 * H, H), jnp.float32,
                                   -bound, bound),
        "w_hh": jax.random.uniform(keys[2], (n_layers, 4 * H, H), jnp.float32,
                                   -bound, bound),
        "b_ih": jax.random.uniform(keys[3], (n_layers, 1, 4 * H), jnp.float32,
                                   -bound, bound),
        "b_hh": jax.random.uniform(keys[4], (n_layers, 1, 4 * H), jnp.float32,
                                   -bound, bound),
        "w_out": jax.random.uniform(keys[5], (output_size, H), jnp.float32,
                                    -bound, bound),
        "b_out": jax.random.uniform(keys[6], (1, output_size), jnp.float32,
                                    -bound, bound),
    }


if __name__ == "__main__":
    # Small TPU-friendly shapes consistent with the module (seq_len=1 per step;
    # char-vocab rounded to 128, hidden chosen so 4H = 128 is lane-dense).
    VOCAB = 128       # input_size == output_size (char vocab)
    HIDDEN = 32
    OUTPUT = 128
    N_LAYERS = 2
    BATCH = 8
    SEQ = 32          # fused autoregressive steps
    CHUNK = 8         # time steps per grid step

    key = jax.random.PRNGKey(0)
    k_params, k_tok = jax.random.split(key)
    params = init_params(k_params, VOCAB, HIDDEN, OUTPUT, N_LAYERS)
    prep = prepare_params(params, hidden_size=HIDDEN, output_size=OUTPUT)

    tokens_seq = jax.random.randint(k_tok, (SEQ, BATCH), 0, VOCAB,
                                    dtype=jnp.int32)
    # init_hidden(batch_size) for LSTM: zero (h, c), each (n_layers, B, H).
    h0 = jnp.zeros((N_LAYERS, BATCH, HIDDEN), jnp.float32)
    c0 = jnp.zeros((N_LAYERS, BATCH, HIDDEN), jnp.float32)

    # Fused multi-step call (all SEQ steps in one kernel launch).
    logits, (h_n, c_n) = charrnn_forward_seq(
        tokens_seq, (h0, c0), prep, n_layers=N_LAYERS, hidden_size=HIDDEN,
        output_size=OUTPUT, chunk=CHUNK)
    jax.block_until_ready((logits, h_n, c_n))

    # Reference: loop the pure-JAX single-step cell SEQ times.
    h, c = h0, c0
    ref_outs = []
    for t in range(SEQ):
        o, (h, c) = charrnn_step_reference(
            tokens_seq[t], (h, c), params,
            n_layers=N_LAYERS, hidden_size=HIDDEN)
        ref_outs.append(o)
    ref_logits = jnp.stack(ref_outs)
    assert jnp.allclose(logits, ref_logits, atol=1e-4, rtol=1e-4)
    assert jnp.allclose(h_n, h, atol=1e-4, rtol=1e-4)
    assert jnp.allclose(c_n, c, atol=1e-4, rtol=1e-4)

    # Single-step call: exact CharRNN.forward(input, hidden) semantics.
    out1, (h1, c1) = charrnn_forward(
        tokens_seq[0], (h0, c0), prep,
        n_layers=N_LAYERS, hidden_size=HIDDEN, output_size=OUTPUT)
    ref1, (rh1, rc1) = charrnn_step_reference(
        tokens_seq[0], (h0, c0), params,
        n_layers=N_LAYERS, hidden_size=HIDDEN)
    assert jnp.allclose(out1, ref1, atol=1e-4, rtol=1e-4)
    assert jnp.allclose(h1, rh1, atol=1e-4, rtol=1e-4)
    assert jnp.allclose(c1, rc1, atol=1e-4, rtol=1e-4)

    print("KERNEL_OK")
</pallas_src>

<mosaic_0001>
module attributes {stable_mosaic.version = 11 : i64} {
  func.func @_charrnn_chunk_kernel(%arg0: i32, %arg1: memref<64x1xi32, #tpu.memory_space<vmem>>, %arg2: memref<128x128xf32, #tpu.memory_space<vmem>>, %arg3: memref<1x128xf32, #tpu.memory_space<vmem>>, %arg4: memref<2x32x128xf32, #tpu.memory_space<vmem>>, %arg5: memref<1x32x128xf32, #tpu.memory_space<vmem>>, %arg6: memref<1x1x128xf32, #tpu.memory_space<vmem>>, %arg7: memref<32x128xf32, #tpu.memory_space<vmem>>, %arg8: memref<1x128xf32, #tpu.memory_space<vmem>>, %arg9: memref<2x8x32xf32, #tpu.memory_space<vmem>>, %arg10: memref<2x8x32xf32, #tpu.memory_space<vmem>>, %arg11: memref<64x128xf32, #tpu.memory_space<vmem>>, %arg12: memref<2x8x32xf32, #tpu.memory_space<vmem>>, %arg13: memref<2x8x32xf32, #tpu.memory_space<vmem>>, %arg14: memref<64x128xf32, #tpu.memory_space<vmem>>, %arg15: memref<64x32xf32, #tpu.memory_space<vmem>>) attributes {dimension_semantics = [#tpu.dimension_semantics<arbitrary>], iteration_bounds = array<i64: 4>, scalar_prefetch = 0 : i64, scratch_operands = 2 : i64, tpu.core_type = #tpu.core_type<tc>, window_params = [{transform_indices = @transform_0, window_bounds = array<i64: 64, 1>}, {pipeline_mode = #tpu.pipeline_mode<synchronous>, transform_indices = @transform_1, window_bounds = array<i64: 128, 128>}, {pipeline_mode = #tpu.pipeline_mode<synchronous>, transform_indices = @transform_2, window_bounds = array<i64: 1, 128>}, {pipeline_mode = #tpu.pipeline_mode<synchronous>, transform_indices = @transform_3, window_bounds = array<i64: 2, 32, 128>}, {pipeline_mode = #tpu.pipeline_mode<synchronous>, transform_indices = @transform_4, window_bounds = array<i64: 1, 32, 128>}, {pipeline_mode = #tpu.pipeline_mode<synchronous>, transform_indices = @transform_5, window_bounds = array<i64: 1, 1, 128>}, {pipeline_mode = #tpu.pipeline_mode<synchronous>, transform_indices = @transform_6, window_bounds = array<i64: 32, 128>}, {pipeline_mode = #tpu.pipeline_mode<synchronous>, transform_indices = @transform_7, window_bounds = array<i64: 1, 128>}, {pipeline_mode = #tpu.pipeline_mode<synchronous>, transform_indices = @transform_8, window_bounds = array<i64: 2, 8, 32>}, {pipeline_mode = #tpu.pipeline_mode<synchronous>, transform_indices = @transform_9, window_bounds = array<i64: 2, 8, 32>}, {transform_indices = @transform_10, window_bounds = array<i64: 64, 128>}, {pipeline_mode = #tpu.pipeline_mode<synchronous>, transform_indices = @transform_11, window_bounds = array<i64: 2, 8, 32>}, {pipeline_mode = #tpu.pipeline_mode<synchronous>, transform_indices = @transform_12, window_bounds = array<i64: 2, 8, 32>}]} {
    %c0_i32 = arith.constant 0 : i32
    %0 = arith.cmpi eq, %arg0, %c0_i32 : i32
    %1 = arith.extui %0 : i1 to i32
    %c0_i32_0 = arith.constant 0 : i32
    %2 = arith.cmpi ne, %1, %c0_i32_0 : i32
    scf.if %2 {
      %c0_201 = arith.constant 0 : index
      %c0_202 = arith.constant 0 : index
      %c0_203 = arith.constant 0 : index
      %418 = vector.load %arg9[%c0_201, %c0_202, %c0_203] : memref<2x8x32xf32, #tpu.memory_space<vmem>>, vector<2x8x32xf32>
      %c0_204 = arith.constant 0 : index
      %c0_205 = arith.constant 0 : index
      %c0_206 = arith.constant 0 : index
      %419 = vector.load %arg12[%c0_204, %c0_205, %c0_206] : memref<2x8x32xf32, #tpu.memory_space<vmem>>, vector<2x8x32xf32>
      tpu.vector_store %arg12[%c0_204, %c0_205, %c0_206], %418 {strides = array<i32>} : memref<2x8x32xf32, #tpu.memory_space<vmem>>, vector<2x8x32xf32>,
      %c0_207 = arith.constant 0 : index
      %c0_208 = arith.constant 0 : index
      %c0_209 = arith.constant 0 : index
      %420 = vector.load %arg10[%c0_207, %c0_208, %c0_209] : memref<2x8x32xf32, #tpu.memory_space<vmem>>, vector<2x8x32xf32>
      %c0_210 = arith.constant 0 : index
      %c0_211 = arith.constant 0 : index
      %c0_212 = arith.constant 0 : index
      %421 = vector.load %arg13[%c0_210, %c0_211, %c0_212] : memref<2x8x32xf32, #tpu.memory_space<vmem>>, vector<2x8x32xf32>
      tpu.vector_store %arg13[%c0_210, %c0_211, %c0_212], %420 {strides = array<i32>} : memref<2x8x32xf32, #tpu.memory_space<vmem>>, vector<2x8x32xf32>,
    } else {
    }
    %c0 = arith.constant 0 : index
    %c0_1 = arith.constant 0 : index
    %3 = vector.load %arg1[%c0, %c0_1] : memref<64x1xi32, #tpu.memory_space<vmem>>, vector<64x1xi32>
    %4 = tpu.iota {dimensions = array<i32: 1>} : vector<64x128xi32>
    %5 = vector.broadcast %3 : vector<64x1xi32> to vector<64x128xi32>
    %6 = arith.cmpi eq, %4, %5 : vector<64x128xi32>
    %7 = arith.extui %6 : vector<64x128xi1> to vector<64x128xi32>
    %8 = arith.sitofp %7 : vector<64x128xi32> to vector<64x128xf32>
    %c0_2 = arith.constant 0 : index
    %c0_3 = arith.constant 0 : index
    %9 = vector.load %arg2[%c0_2, %c0_3] : memref<128x128xf32, #tpu.memory_space<vmem>>, vector<128x128xf32>
    %cst = arith.constant dense<0.000000e+00> : vector<64x128xf32>
    %10 = tpu.matmul %8, %9, %cst {dimension_numbers = #tpu.dot_dimension_numbers<[1], [0], [0], [1], [0, 0, 1, 1], [], []>} : vector<64x128xf32>, vector<128x128xf32>, vector<64x128xf32> -> vector<64x128xf32>
    %c0_4 = arith.constant 0 : index
    %c0_5 = arith.constant 0 : index
    %11 = vector.load %arg3[%c0_4, %c0_5] : memref<1x128xf32, #tpu.memory_space<vmem>>, vector<1x128xf32>
    %12 = vector.broadcast %11 : vector<1x128xf32> to vector<64x128xf32>
    %13 = arith.addf %10, %12 : vector<64x128xf32>
    %c0_6 = arith.constant 0 : index
    %c0_7 = arith.constant 0 : index
    %14 = vector.load %arg14[%c0_6, %c0_7] : memref<64x128xf32, #tpu.memory_space<vmem>>, vector<64x128xf32>
    tpu.vector_store %arg14[%c0_6, %c0_7], %13 {strides = array<i32>} : memref<64x128xf32, #tpu.memory_space<vmem>>, vector<64x128xf32>,
    %c0_8 = arith.constant 0 : index
    %c0_9 = arith.constant 0 : index
    %c0_10 = arith.constant 0 : index
    %15 = vector.load %arg12[%c0_8, %c0_9, %c0_10] : memref<2x8x32xf32, #tpu.memory_space<vmem>>, vector<1x8x32xf32>
    %16 = vector.shape_cast %15 : vector<1x8x32xf32> to vector<8x32xf32>
    %c1 = arith.constant 1 : index
    %c0_11 = arith.constant 0 : index
    %c0_12 = arith.constant 0 : index
    %17 = vector.load %arg12[%c1, %c0_11, %c0_12] : memref<2x8x32xf32, #tpu.memory_space<vmem>>, vector<1x8x32xf32>
    %18 = vector.shape_cast %17 : vector<1x8x32xf32> to vector<8x32xf32>
    %c0_13 = arith.constant 0 : index
    %c0_14 = arith.constant 0 : index
    %c0_15 = arith.constant 0 : index
    %19 = vector.load %arg13[%c0_13, %c0_14, %c0_15] : memref<2x8x32xf32, #tpu.memory_space<vmem>>, vector<1x8x32xf32>
    %20 = vector.shape_cast %19 : vector<1x8x32xf32> to vector<8x32xf32>
    %c1_16 = arith.constant 1 : index
    %c0_17 = arith.constant 0 : index
    %c0_18 = arith.constant 0 : index
    %21 = vector.load %arg13[%c1_16, %c0_17, %c0_18] : memref<2x8x32xf32, #tpu.memory_space<vmem>>, vector<1x8x32xf32>
    %22 = vector.shape_cast %21 : vector<1x8x32xf32> to vector<8x32xf32>
    %c0_19 = arith.constant 0 : index
    %c0_20 = arith.constant 0 : index
    %23 = vector.load %arg14[%c0_19, %c0_20] : memref<64x128xf32, #tpu.memory_space<vmem>>, vector<8x128xf32>
    %c0_21 = arith.constant 0 : index
    %c0_22 = arith.constant 0 : index
    %c0_23 = arith.constant 0 : index
    %24 = vector.load %arg4[%c0_21, %c0_22, %c0_23] : memref<2x32x128xf32, #tpu.memory_space<vmem>>, vector<1x32x128xf32>
    %25 = vector.shape_cast %24 : vector<1x32x128xf32> to vector<32x128xf32>
    %cst_24 = arith.constant dense<0.000000e+00> : vector<8x128xf32>
    %26 = tpu.matmul %16, %25, %cst_24 {dimension_numbers = #tpu.dot_dimension_numbers<[1], [0], [0], [1], [0, 0, 1, 1], [], []>} : vector<8x32xf32>, vector<32x128xf32>, vector<8x128xf32> -> vector<8x128xf32>
    %27 = arith.addf %23, %26 : vector<8x128xf32>
    %28 = arith.negf %27 : vector<8x128xf32>
    %29 = math.exp %28 : vector<8x128xf32>
    %cst_25 = arith.constant 1.000000e+00 : f32
    %30 = vector.broadcast %cst_25 : f32 to vector<8x128xf32>
    %31 = arith.addf %30, %29 : vector<8x128xf32>
    %32 = arith.divf %30, %31 : vector<8x128xf32>
    %33 = math.tanh %27 : vector<8x128xf32>
    %34 = vector.extract_strided_slice %32 {offsets = [0, 0], sizes = [8, 32], strides = [1, 1]} : vector<8x128xf32> to vector<8x32xf32>
    %35 = vector.extract_strided_slice %32 {offsets = [0, 32], sizes = [8, 32], strides = [1, 1]} : vector<8x128xf32> to vector<8x32xf32>
    %36 = vector.extract_strided_slice %33 {offsets = [0, 64], sizes = [8, 32], strides = [1, 1]} : vector<8x128xf32> to vector<8x32xf32>
    %37 = vector.extract_strided_slice %32 {offsets = [0, 96], sizes = [8, 32], strides = [1, 1]} : vector<8x128xf32> to vector<8x32xf32>
    %38 = arith.mulf %35, %20 : vector<8x32xf32>
    %39 = arith.mulf %34, %36 : vector<8x32xf32>
    %40 = arith.addf %38, %39 : vector<8x32xf32>
    %41 = math.tanh %40 : vector<8x32xf32>
    %42 = arith.mulf %37, %41 : vector<8x32xf32>
    %c0_26 = arith.constant 0 : index
    %c0_27 = arith.constant 0 : index
    %c0_28 = arith.constant 0 : index
    %43 = vector.load %arg5[%c0_26, %c0_27, %c0_28] : memref<1x32x128xf32, #tpu.memory_space<vmem>>, vector<1x32x128xf32>
    %44 = vector.shape_cast %43 : vector<1x32x128xf32> to vector<32x128xf32>
    %cst_29 = arith.constant dense<0.000000e+00> : vector<8x128xf32>
    %45 = tpu.matmul %42, %44, %cst_29 {dimension_numbers = #tpu.dot_dimension_numbers<[1], [0], [0], [1], [0, 0, 1, 1], [], []>} : vector<8x32xf32>, vector<32x128xf32>, vector<8x128xf32> -> vector<8x128xf32>
    %c1_30 = arith.constant 1 : index
    %c0_31 = arith.constant 0 : index
    %c0_32 = arith.constant 0 : index
    %46 = vector.load %arg4[%c1_30, %c0_31, %c0_32] : memref<2x32x128xf32, #tpu.memory_space<vmem>>, vector<1x32x128xf32>
    %47 = vector.shape_cast %46 : vector<1x32x128xf32> to vector<32x128xf32>
    %cst_33 = arith.constant dense<0.000000e+00> : vector<8x128xf32>
    %48 = tpu.matmul %18, %47, %cst_33 {dimension_numbers = #tpu.dot_dimension_numbers<[1], [0], [0], [1], [0, 0, 1, 1], [], []>} : vector<8x32xf32>, vector<32x128xf32>, vector<8x128xf32> -> vector<8x128xf32>
    %49 = arith.addf %45, %48 : vector<8x128xf32>
    %c0_34 = arith.constant 0 : index
    %c0_35 = arith.constant 0 : index
    %c0_36 = arith.constant 0 : index
    %50 = vector.load %arg6[%c0_34, %c0_35, %c0_36] : memref<1x1x128xf32, #tpu.memory_space<vmem>>, vector<1x1x128xf32>
    %51 = vector.shape_cast %50 : vector<1x1x128xf32> to vector<1x128xf32>
    %52 = vector.broadcast %51 : vector<1x128xf32> to vector<8x128xf32>
    %53 = arith.addf %49, %52 : vector<8x128xf32>
    %54 = arith.negf %53 : vector<8x128xf32>
    %55 = math.exp %54 : vector<8x128xf32>
    %cst_37 = arith.constant 1.000000e+00 : f32
    %56 = vector.broadcast %cst_37 : f32 to vector<8x128xf32>
    %57 = arith.addf %56, %55 : vector<8x128xf32>
    %58 = arith.divf %56, %57 : vector<8x128xf32>
    %59 = math.tanh %53 : vector<8x128xf32>
    %60 = vector.extract_strided_slice %58 {offsets = [0, 0], sizes = [8, 32], strides = [1, 1]} : vector<8x128xf32> to vector<8x32xf32>
    %61 = vector.extract_strided_slice %58 {offsets = [0, 32], sizes = [8, 32], strides = [1, 1]} : vector<8x128xf32> to vector<8x32xf32>
    %62 = vector.extract_strided_slice %59 {offsets = [0, 64], sizes = [8, 32], strides = [1, 1]} : vector<8x128xf32> to vector<8x32xf32>
    %63 = vector.extract_strided_slice %58 {offsets = [0, 96], sizes = [8, 32], strides = [1, 1]} : vector<8x128xf32> to vector<8x32xf32>
    %64 = arith.mulf %61, %22 : vector<8x32xf32>
    %65 = arith.mulf %60, %62 : vector<8x32xf32>
    %66 = arith.addf %64, %65 : vector<8x32xf32>
    %67 = math.tanh %66 : vector<8x32xf32>
    %68 = arith.mulf %63, %67 : vector<8x32xf32>
    %c0_38 = arith.constant 0 : index
    %c0_39 = arith.constant 0 : index
    %69 = vector.load %arg15[%c0_38, %c0_39] : memref<64x32xf32, #tpu.memory_space<vmem>>, vector<8x32xf32>
    tpu.vector_store %arg15[%c0_38, %c0_39], %68 {strides = array<i32>} : memref<64x32xf32, #tpu.memory_space<vmem>>, vector<8x32xf32>,
    %c8 = arith.constant 8 : index
    %c0_40 = arith.constant 0 : index
    %70 = vector.load %arg14[%c8, %c0_40] : memref<64x128xf32, #tpu.memory_space<vmem>>, vector<8x128xf32>
    %c0_41 = arith.constant 0 : index
    %c0_42 = arith.constant 0 : index
    %c0_43 = arith.constant 0 : index
    %71 = vector.load %arg4[%c0_41, %c0_42, %c0_43] : memref<2x32x128xf32, #tpu.memory_space<vmem>>, vector<1x32x128xf32>
    %72 = vector.shape_cast %71 : vector<1x32x128xf32> to vector<32x128xf32>
    %cst_44 = arith.constant dense<0.000000e+00> : vector<8x128xf32>
    %73 = tpu.matmul %42, %72, %cst_44 {dimension_numbers = #tpu.dot_dimension_numbers<[1], [0], [0], [1], [0, 0, 1, 1], [], []>} : vector<8x32xf32>, vector<32x128xf32>, vector<8x128xf32> -> vector<8x128xf32>
    %74 = arith.addf %70, %73 : vector<8x128xf32>
    %75 = arith.negf %74 : vector<8x128xf32>
    %76 = math.exp %75 : vector<8x128xf32>
    %cst_45 = arith.constant 1.000000e+00 : f32
    %77 = vector.broadcast %cst_45 : f32 to vector<8x128xf32>
    %78 = arith.addf %77, %76 : vector<8x128xf32>
    %79 = arith.divf %77, %78 : vector<8x128xf32>
    %80 = math.tanh %74 : vector<8x128xf32>
    %81 = vector.extract_strided_slice %79 {offsets = [0, 0], sizes = [8, 32], strides = [1, 1]} : vector<8x128xf32> to vector<8x32xf32>
    %82 = vector.extract_strided_slice %79 {offsets = [0, 32], sizes = [8, 32], strides = [1, 1]} : vector<8x128xf32> to vector<8x32xf32>
    %83 = vector.extract_strided_slice %80 {offsets = [0, 64], sizes = [8, 32], strides = [1, 1]} : vector<8x128xf32> to vector<8x32xf32>
    %84 = vector.extract_strided_slice %79 {offsets = [0, 96], sizes = [8, 32], strides = [1, 1]} : vector<8x128xf32> to vector<8x32xf32>
    %85 = arith.mulf %82, %40 : vector<8x32xf32>
    %86 = arith.mulf %81, %83 : vector<8x32xf32>
    %87 = arith.addf %85, %86 : vector<8x32xf32>
    %88 = math.tanh %87 : vector<8x32xf32>
    %89 = arith.mulf %84, %88 : vector<8x32xf32>
    %c0_46 = arith.constant 0 : index
    %c0_47 = arith.constant 0 : index
    %c0_48 = arith.constant 0 : index
    %90 = vector.load %arg5[%c0_46, %c0_47, %c0_48] : memref<1x32x128xf32, #tpu.memory_space<vmem>>, vector<1x32x128xf32>
    %91 = vector.shape_cast %90 : vector<1x32x128xf32> to vector<32x128xf32>
    %cst_49 = arith.constant dense<0.000000e+00> : vector<8x128xf32>
    %92 = tpu.matmul %89, %91, %cst_49 {dimension_numbers = #tpu.dot_dimension_numbers<[1], [0], [0], [1], [0, 0, 1, 1], [], []>} : vector<8x32xf32>, vector<32x128xf32>, vector<8x128xf32> -> vector<8x128xf32>
    %c1_50 = arith.constant 1 : index
    %c0_51 = arith.constant 0 : index
    %c0_52 = arith.constant 0 : index
    %93 = vector.load %arg4[%c1_50, %c0_51, %c0_52] : memref<2x32x128xf32, #tpu.memory_space<vmem>>, vector<1x32x128xf32>
    %94 = vector.shape_cast %93 : vector<1x32x128xf32> to vector<32x128xf32>
    %cst_53 = arith.constant dense<0.000000e+00> : vector<8x128xf32>
    %95 = tpu.matmul %68, %94, %cst_53 {dimension_numbers = #tpu.dot_dimension_numbers<[1], [0], [0], [1], [0, 0, 1, 1], [], []>} : vector<8x32xf32>, vector<32x128xf32>, vector<8x128xf32> -> vector<8x128xf32>
    %96 = arith.addf %92, %95 : vector<8x128xf32>
    %c0_54 = arith.constant 0 : index
    %c0_55 = arith.constant 0 : index
    %c0_56 = arith.constant 0 : index
    %97 = vector.load %arg6[%c0_54, %c0_55, %c0_56] : memref<1x1x128xf32, #tpu.memory_space<vmem>>, vector<1x1x128xf32>
    %98 = vector.shape_cast %97 : vector<1x1x128xf32> to vector<1x128xf32>
    %99 = vector.broadcast %98 : vector<1x128xf32> to vector<8x128xf32>
    %100 = arith.addf %96, %99 : vector<8x128xf32>
    %101 = arith.negf %100 : vector<8x128xf32>
    %102 = math.exp %101 : vector<8x128xf32>
    %cst_57 = arith.constant 1.000000e+00 : f32
    %103 = vector.broadcast %cst_57 : f32 to vector<8x128xf32>
    %104 = arith.addf %103, %102 : vector<8x128xf32>
    %105 = arith.divf %103, %104 : vector<8x128xf32>
    %106 = math.tanh %100 : vector<8x128xf32>
    %107 = vector.extract_strided_slice %105 {offsets = [0, 0], sizes = [8, 32], strides = [1, 1]} : vector<8x128xf32> to vector<8x32xf32>
    %108 = vector.extract_strided_slice %105 {offsets = [0, 32], sizes = [8, 32], strides = [1, 1]} : vector<8x128xf32> to vector<8x32xf32>
    %109 = vector.extract_strided_slice %106 {offsets = [0, 64], sizes = [8, 32], strides = [1, 1]} : vector<8x128xf32> to vector<8x32xf32>
    %110 = vector.extract_strided_slice %105 {offsets = [0, 96], sizes = [8, 32], strides = [1, 1]} : vector<8x128xf32> to vector<8x32xf32>
    %111 = arith.mulf %108, %66 : vector<8x32xf32>
    %112 = arith.mulf %107, %109 : vector<8x32xf32>
    %113 = arith.addf %111, %112 : vector<8x32xf32>
    %114 = math.tanh %113 : vector<8x32xf32>
    %115 = arith.mulf %110, %114 : vector<8x32xf32>
    %c8_58 = arith.constant 8 : index
    %c0_59 = arith.constant 0 : index
    %116 = vector.load %arg15[%c8_58, %c0_59] : memref<64x32xf32, #tpu.memory_space<vmem>>, vector<8x32xf32>
    tpu.vector_store %arg15[%c8_58, %c0_59], %115 {strides = array<i32>} : memref<64x32xf32, #tpu.memory_space<vmem>>, vector<8x32xf32>,
    %c16 = arith.constant 16 : index
    %c0_60 = arith.constant 0 : index
    %117 = vector.load %arg14[%c16, %c0_60] : memref<64x128xf32, #tpu.memory_space<vmem>>, vector<8x128xf32>
    %c0_61 = arith.constant 0 : index
    %c0_62 = arith.constant 0 : index
    %c0_63 = arith.constant 0 : index
    %118 = vector.load %arg4[%c0_61, %c0_62, %c0_63] : memref<2x32x128xf32, #tpu.memory_space<vmem>>, vector<1x32x128xf32>
    %119 = vector.shape_cast %118 : vector<1x32x128xf32> to vector<32x128xf32>
    %cst_64 = arith.constant dense<0.000000e+00> : vector<8x128xf32>
    %120 = tpu.matmul %89, %119, %cst_64 {dimension_numbers = #tpu.dot_dimension_numbers<[1], [0], [0], [1], [0, 0, 1, 1], [], []>} : vector<8x32xf32>, vector<32x128xf32>, vector<8x128xf32> -> vector<8x128xf32>
    %121 = arith.addf %117, %120 : vector<8x128xf32>
    %122 = arith.negf %121 : vector<8x128xf32>
    %123 = math.exp %122 : vector<8x128xf32>
    %cst_65 = arith.constant 1.000000e+00 : f32
    %124 = vector.broadcast %cst_65 : f32 to vector<8x128xf32>
    %125 = arith.addf %124, %123 : vector<8x128xf32>
    %126 = arith.divf %124, %125 : vector<8x128xf32>
    %127 = math.tanh %121 : vector<8x128xf32>
    %128 = vector.extract_strided_slice %126 {offsets = [0, 0], sizes = [8, 32], strides = [1, 1]} : vector<8x128xf32> to vector<8x32xf32>
    %129 = vector.extract_strided_slice %126 {offsets = [0, 32], sizes = [8, 32], strides = [1, 1]} : vector<8x128xf32> to vector<8x32xf32>
    %130 = vector.extract_strided_slice %127 {offsets = [0, 64], sizes = [8, 32], strides = [1, 1]} : vector<8x128xf32> to vector<8x32xf32>
    %131 = vector.extract_strided_slice %126 {offsets = [0, 96], sizes = [8, 32], strides = [1, 1]} : vector<8x128xf32> to vector<8x32xf32>
    %132 = arith.mulf %129, %87 : vector<8x32xf32>
    %133 = arith.mulf %128, %130 : vector<8x32xf32>
    %134 = arith.addf %132, %133 : vector<8x32xf32>
    %135 = math.tanh %134 : vector<8x32xf32>
    %136 = arith.mulf %131, %135 : vector<8x32xf32>
    %c0_66 = arith.constant 0 : index
    %c0_67 = arith.constant 0 : index
    %c0_68 = arith.constant 0 : index
    %137 = vector.load %arg5[%c0_66, %c0_67, %c0_68] : memref<1x32x128xf32, #tpu.memory_space<vmem>>, vector<1x32x128xf32>
    %138 = vector.shape_cast %137 : vector<1x32x128xf32> to vector<32x128xf32>
    %cst_69 = arith.constant dense<0.000000e+00> : vector<8x128xf32>
    %139 = tpu.matmul %136, %138, %cst_69 {dimension_numbers = #tpu.dot_dimension_numbers<[1], [0], [0], [1], [0, 0, 1, 1], [], []>} : vector<8x32xf32>, vector<32x128xf32>, vector<8x128xf32> -> vector<8x128xf32>
    %c1_70 = arith.constant 1 : index
    %c0_71 = arith.constant 0 : index
    %c0_72 = arith.constant 0 : index
    %140 = vector.load %arg4[%c1_70, %c0_71, %c0_72] : memref<2x32x128xf32, #tpu.memory_space<vmem>>, vector<1x32x128xf32>
    %141 = vector.shape_cast %140 : vector<1x32x128xf32> to vector<32x128xf32>
    %cst_73 = arith.constant dense<0.000000e+00> : vector<8x128xf32>
    %142 = tpu.matmul %115, %141, %cst_73 {dimension_numbers = #tpu.dot_dimension_numbers<[1], [0], [0], [1], [0, 0, 1, 1], [], []>} : vector<8x32xf32>, vector<32x128xf32>, vector<8x128xf32> -> vector<8x128xf32>
    %143 = arith.addf %139, %142 : vector<8x128xf32>
    %c0_74 = arith.constant 0 : index
    %c0_75 = arith.constant 0 : index
    %c0_76 = arith.constant 0 : index
    %144 = vector.load %arg6[%c0_74, %c0_75, %c0_76] : memref<1x1x128xf32, #tpu.memory_space<vmem>>, vector<1x1x128xf32>
    %145 = vector.shape_cast %144 : vector<1x1x128xf32> to vector<1x128xf32>
    %146 = vector.broadcast %145 : vector<1x128xf32> to vector<8x128xf32>
    %147 = arith.addf %143, %146 : vector<8x128xf32>
    %148 = arith.negf %147 : vector<8x128xf32>
    %149 = math.exp %148 : vector<8x128xf32>
    %cst_77 = arith.constant 1.000000e+00 : f32
    %150 = vector.broadcast %cst_77 : f32 to vector<8x128xf32>
    %151 = arith.addf %150, %149 : vector<8x128xf32>
    %152 = arith.divf %150, %151 : vector<8x128xf32>
    %153 = math.tanh %147 : vector<8x128xf32>
    %154 = vector.extract_strided_slice %152 {offsets = [0, 0], sizes = [8, 32], strides = [1, 1]} : vector<8x128xf32> to vector<8x32xf32>
    %155 = vector.extract_strided_slice %152 {offsets = [0, 32], sizes = [8, 32], strides = [1, 1]} : vector<8x128xf32> to vector<8x32xf32>
    %156 = vector.extract_strided_slice %153 {offsets = [0, 64], sizes = [8, 32], strides = [1, 1]} : vector<8x128xf32> to vector<8x32xf32>
    %157 = vector.extract_strided_slice %152 {offsets = [0, 96], sizes = [8, 32], strides = [1, 1]} : vector<8x128xf32> to vector<8x32xf32>
    %158 = arith.mulf %155, %113 : vector<8x32xf32>
    %159 = arith.mulf %154, %156 : vector<8x32xf32>
    %160 = arith.addf %158, %159 : vector<8x32xf32>
    %161 = math.tanh %160 : vector<8x32xf32>
    %162 = arith.mulf %157, %161 : vector<8x32xf32>
    %c16_78 = arith.constant 16 : index
    %c0_79 = arith.constant 0 : index
    %163 = vector.load %arg15[%c16_78, %c0_79] : memref<64x32xf32, #tpu.memory_space<vmem>>, vector<8x32xf32>
    tpu.vector_store %arg15[%c16_78, %c0_79], %162 {strides = array<i32>} : memref<64x32xf32, #tpu.memory_space<vmem>>, vector<8x32xf32>,
    %c24 = arith.constant 24 : index
    %c0_80 = arith.constant 0 : index
    %164 = vector.load %arg14[%c24, %c0_80] : memref<64x128xf32, #tpu.memory_space<vmem>>, vector<8x128xf32>
    %c0_81 = arith.constant 0 : index
    %c0_82 = arith.constant 0 : index
    %c0_83 = arith.constant 0 : index
    %165 = vector.load %arg4[%c0_81, %c0_82, %c0_83] : memref<2x32x128xf32, #tpu.memory_space<vmem>>, vector<1x32x128xf32>
    %166 = vector.shape_cast %165 : vector<1x32x128xf32> to vector<32x128xf32>
    %cst_84 = arith.constant dense<0.000000e+00> : vector<8x128xf32>
    %167 = tpu.matmul %136, %166, %cst_84 {dimension_numbers = #tpu.dot_dimension_numbers<[1], [0], [0], [1], [0, 0, 1, 1], [], []>} : vector<8x32xf32>, vector<32x128xf32>, vector<8x128xf32> -> vector<8x128xf32>
    %168 = arith.addf %164, %167 : vector<8x128xf32>
    %169 = arith.negf %168 : vector<8x128xf32>
    %170 = math.exp %169 : vector<8x128xf32>
    %cst_85 = arith.constant 1.000000e+00 : f32
    %171 = vector.broadcast %cst_85 : f32 to vector<8x128xf32>
    %172 = arith.addf %171, %170 : vector<8x128xf32>
    %173 = arith.divf %171, %172 : vector<8x128xf32>
    %174 = math.tanh %168 : vector<8x128xf32>
    %175 = vector.extract_strided_slice %173 {offsets = [0, 0], sizes = [8, 32], strides = [1, 1]} : vector<8x128xf32> to vector<8x32xf32>
    %176 = vector.extract_strided_slice %173 {offsets = [0, 32], sizes = [8, 32], strides = [1, 1]} : vector<8x128xf32> to vector<8x32xf32>
    %177 = vector.extract_strided_slice %174 {offsets = [0, 64], sizes = [8, 32], strides = [1, 1]} : vector<8x128xf32> to vector<8x32xf32>
    %178 = vector.extract_strided_slice %173 {offsets = [0, 96], sizes = [8, 32], strides = [1, 1]} : vector<8x128xf32> to vector<8x32xf32>
    %179 = arith.mulf %176, %134 : vector<8x32xf32>
    %180 = arith.mulf %175, %177 : vector<8x32xf32>
    %181 = arith.addf %179, %180 : vector<8x32xf32>
    %182 = math.tanh %181 : vector<8x32xf32>
    %183 = arith.mulf %178, %182 : vector<8x32xf32>
    %c0_86 = arith.constant 0 : index
    %c0_87 = arith.constant 0 : index
    %c0_88 = arith.constant 0 : index
    %184 = vector.load %arg5[%c0_86, %c0_87, %c0_88] : memref<1x32x128xf32, #tpu.memory_space<vmem>>, vector<1x32x128xf32>
    %185 = vector.shape_cast %184 : vector<1x32x128xf32> to vector<32x128xf32>
    %cst_89 = arith.constant dense<0.000000e+00> : vector<8x128xf32>
    %186 = tpu.matmul %183, %185, %cst_89 {dimension_numbers = #tpu.dot_dimension_numbers<[1], [0], [0], [1], [0, 0, 1, 1], [], []>} : vector<8x32xf32>, vector<32x128xf32>, vector<8x128xf32> -> vector<8x128xf32>
    %c1_90 = arith.constant 1 : index
    %c0_91 = arith.constant 0 : index
    %c0_92 = arith.constant 0 : index
    %187 = vector.load %arg4[%c1_90, %c0_91, %c0_92] : memref<2x32x128xf32, #tpu.memory_space<vmem>>, vector<1x32x128xf32>
    %188 = vector.shape_cast %187 : vector<1x32x128xf32> to vector<32x128xf32>
    %cst_93 = arith.constant dense<0.000000e+00> : vector<8x128xf32>
    %189 = tpu.matmul %162, %188, %cst_93 {dimension_numbers = #tpu.dot_dimension_numbers<[1], [0], [0], [1], [0, 0, 1, 1], [], []>} : vector<8x32xf32>, vector<32x128xf32>, vector<8x128xf32> -> vector<8x128xf32>
    %190 = arith.addf %186, %189 : vector<8x128xf32>
    %c0_94 = arith.constant 0 : index
    %c0_95 = arith.constant 0 : index
    %c0_96 = arith.constant 0 : index
    %191 = vector.load %arg6[%c0_94, %c0_95, %c0_96] : memref<1x1x128xf32, #tpu.memory_space<vmem>>, vector<1x1x128xf32>
    %192 = vector.shape_cast %191 : vector<1x1x128xf32> to vector<1x128xf32>
    %193 = vector.broadcast %192 : vector<1x128xf32> to vector<8x128xf32>
    %194 = arith.addf %190, %193 : vector<8x128xf32>
    %195 = arith.negf %194 : vector<8x128xf32>
    %196 = math.exp %195 : vector<8x128xf32>
    %cst_97 = arith.constant 1.000000e+00 : f32
    %197 = vector.broadcast %cst_97 : f32 to vector<8x128xf32>
    %198 = arith.addf %197, %196 : vector<8x128xf32>
    %199 = arith.divf %197, %198 : vector<8x128xf32>
    %200 = math.tanh %194 : vector<8x128xf32>
    %201 = vector.extract_strided_slice %199 {offsets = [0, 0], sizes = [8, 32], strides = [1, 1]} : vector<8x128xf32> to vector<8x32xf32>
    %202 = vector.extract_strided_slice %199 {offsets = [0, 32], sizes = [8, 32], strides = [1, 1]} : vector<8x128xf32> to vector<8x32xf32>
    %203 = vector.extract_strided_slice %200 {offsets = [0, 64], sizes = [8, 32], strides = [1, 1]} : vector<8x128xf32> to vector<8x32xf32>
    %204 = vector.extract_strided_slice %199 {offsets = [0, 96], sizes = [8, 32], strides = [1, 1]} : vector<8x128xf32> to vector<8x32xf32>
    %205 = arith.mulf %202, %160 : vector<8x32xf32>
    %206 = arith.mulf %201, %203 : vector<8x32xf32>
    %207 = arith.addf %205, %206 : vector<8x32xf32>
    %208 = math.tanh %207 : vector<8x32xf32>
    %209 = arith.mulf %204, %208 : vector<8x32xf32>
    %c24_98 = arith.constant 24 : index
    %c0_99 = arith.constant 0 : index
    %210 = vector.load %arg15[%c24_98, %c0_99] : memref<64x32xf32, #tpu.memory_space<vmem>>, vector<8x32xf32>
    tpu.vector_store %arg15[%c24_98, %c0_99], %209 {strides = array<i32>} : memref<64x32xf32, #tpu.memory_space<vmem>>, vector<8x32xf32>,
    %c32 = arith.constant 32 : index
    %c0_100 = arith.constant 0 : index
    %211 = vector.load %arg14[%c32, %c0_100] : memref<64x128xf32, #tpu.memory_space<vmem>>, vector<8x128xf32>
    %c0_101 = arith.constant 0 : index
    %c0_102 = arith.constant 0 : index
    %c0_103 = arith.constant 0 : index
    %212 = vector.load %arg4[%c0_101, %c0_102, %c0_103] : memref<2x32x128xf32, #tpu.memory_space<vmem>>, vector<1x32x128xf32>
    %213 = vector.shape_cast %212 : vector<1x32x128xf32> to vector<32x128xf32>
    %cst_104 = arith.constant dense<0.000000e+00> : vector<8x128xf32>
    %214 = tpu.matmul %183, %213, %cst_104 {dimension_numbers = #tpu.dot_dimension_numbers<[1], [0], [0], [1], [0, 0, 1, 1], [], []>} : vector<8x32xf32>, vector<32x128xf32>, vector<8x128xf32> -> vector<8x128xf32>
    %215 = arith.addf %211, %214 : vector<8x128xf32>
    %216 = arith.negf %215 : vector<8x128xf32>
    %217 = math.exp %216 : vector<8x128xf32>
    %cst_105 = arith.constant 1.000000e+00 : f32
    %218 = vector.broadcast %cst_105 : f32 to vector<8x128xf32>
    %219 = arith.addf %218, %217 : vector<8x128xf32>
    %220 = arith.divf %218, %219 : vector<8x128xf32>
    %221 = math.tanh %215 : vector<8x128xf32>
    %222 = vector.extract_strided_slice %220 {offsets = [0, 0], sizes = [8, 32], strides = [1, 1]} : vector<8x128xf32> to vector<8x32xf32>
    %223 = vector.extract_strided_slice %220 {offsets = [0, 32], sizes = [8, 32], strides = [1, 1]} : vector<8x128xf32> to vector<8x32xf32>
    %224 = vector.extract_strided_slice %221 {offsets = [0, 64], sizes = [8, 32], strides = [1, 1]} : vector<8x128xf32> to vector<8x32xf32>
    %225 = vector.extract_strided_slice %220 {offsets = [0, 96], sizes = [8, 32], strides = [1, 1]} : vector<8x128xf32> to vector<8x32xf32>
    %226 = arith.mulf %223, %181 : vector<8x32xf32>
    %227 = arith.mulf %222, %224 : vector<8x32xf32>
    %228 = arith.addf %226, %227 : vector<8x32xf32>
    %229 = math.tanh %228 : vector<8x32xf32>
    %230 = arith.mulf %225, %229 : vector<8x32xf32>
    %c0_106 = arith.constant 0 : index
    %c0_107 = arith.constant 0 : index
    %c0_108 = arith.constant 0 : index
    %231 = vector.load %arg5[%c0_106, %c0_107, %c0_108] : memref<1x32x128xf32, #tpu.memory_space<vmem>>, vector<1x32x128xf32>
    %232 = vector.shape_cast %231 : vector<1x32x128xf32> to vector<32x128xf32>
    %cst_109 = arith.constant dense<0.000000e+00> : vector<8x128xf32>
    %233 = tpu.matmul %230, %232, %cst_109 {dimension_numbers = #tpu.dot_dimension_numbers<[1], [0], [0], [1], [0, 0, 1, 1], [], []>} : vector<8x32xf32>, vector<32x128xf32>, vector<8x128xf32> -> vector<8x128xf32>
    %c1_110 = arith.constant 1 : index
    %c0_111 = arith.constant 0 : index
    %c0_112 = arith.constant 0 : index
    %234 = vector.load %arg4[%c1_110, %c0_111, %c0_112] : memref<2x32x128xf32, #tpu.memory_space<vmem>>, vector<1x32x128xf32>
    %235 = vector.shape_cast %234 : vector<1x32x128xf32> to vector<32x128xf32>
    %cst_113 = arith.constant dense<0.000000e+00> : vector<8x128xf32>
    %236 = tpu.matmul %209, %235, %cst_113 {dimension_numbers = #tpu.dot_dimension_numbers<[1], [0], [0], [1], [0, 0, 1, 1], [], []>} : vector<8x32xf32>, vector<32x128xf32>, vector<8x128xf32> -> vector<8x128xf32>
    %237 = arith.addf %233, %236 : vector<8x128xf32>
    %c0_114 = arith.constant 0 : index
    %c0_115 = arith.constant 0 : index
    %c0_116 = arith.constant 0 : index
    %238 = vector.load %arg6[%c0_114, %c0_115, %c0_116] : memref<1x1x128xf32, #tpu.memory_space<vmem>>, vector<1x1x128xf32>
    %239 = vector.shape_cast %238 : vector<1x1x128xf32> to vector<1x128xf32>
    %240 = vector.broadcast %239 : vector<1x128xf32> to vector<8x128xf32>
    %241 = arith.addf %237, %240 : vector<8x128xf32>
    %242 = arith.negf %241 : vector<8x128xf32>
    %243 = math.exp %242 : vector<8x128xf32>
    %cst_117 = arith.constant 1.000000e+00 : f32
    %244 = vector.broadcast %cst_117 : f32 to vector<8x128xf32>
    %245 = arith.addf %244, %243 : vector<8x128xf32>
    %246 = arith.divf %244, %245 : vector<8x128xf32>
    %247 = math.tanh %241 : vector<8x128xf32>
    %248 = vector.extract_strided_slice %246 {offsets = [0, 0], sizes = [8, 32], strides = [1, 1]} : vector<8x128xf32> to vector<8x32xf32>
    %249 = vector.extract_strided_slice %246 {offsets = [0, 32], sizes = [8, 32], strides = [1, 1]} : vector<8x128xf32> to vector<8x32xf32>
    %250 = vector.extract_strided_slice %247 {offsets = [0, 64], sizes = [8, 32], strides = [1, 1]} : vector<8x128xf32> to vector<8x32xf32>
    %251 = vector.extract_strided_slice %246 {offsets = [0, 96], sizes = [8, 32], strides = [1, 1]} : vector<8x128xf32> to vector<8x32xf32>
    %252 = arith.mulf %249, %207 : vector<8x32xf32>
    %253 = arith.mulf %248, %250 : vector<8x32xf32>
    %254 = arith.addf %252, %253 : vector<8x32xf32>
    %255 = math.tanh %254 : vector<8x32xf32>
    %256 = arith.mulf %251, %255 : vector<8x32xf32>
    %c32_118 = arith.constant 32 : index
    %c0_119 = arith.constant 0 : index
    %257 = vector.load %arg15[%c32_118, %c0_119] : memref<64x32xf32, #tpu.memory_space<vmem>>, vector<8x32xf32>
    tpu.vector_store %arg15[%c32_118, %c0_119], %256 {strides = array<i32>} : memref<64x32xf32, #tpu.memory_space<vmem>>, vector<8x32xf32>,
    %c40 = arith.constant 40 : index
    %c0_120 = arith.constant 0 : index
    %258 = vector.load %arg14[%c40, %c0_120] : memref<64x128xf32, #tpu.memory_space<vmem>>, vector<8x128xf32>
    %c0_121 = arith.constant 0 : index
    %c0_122 = arith.constant 0 : index
    %c0_123 = arith.constant 0 : index
    %259 = vector.load %arg4[%c0_121, %c0_122, %c0_123] : memref<2x32x128xf32, #tpu.memory_space<vmem>>, vector<1x32x128xf32>
    %260 = vector.shape_cast %259 : vector<1x32x128xf32> to vector<32x128xf32>
    %cst_124 = arith.constant dense<0.000000e+00> : vector<8x128xf32>
    %261 = tpu.matmul %230, %260, %cst_124 {dimension_numbers = #tpu.dot_dimension_numbers<[1], [0], [0], [1], [0, 0, 1, 1], [], []>} : vector<8x32xf32>, vector<32x128xf32>, vector<8x128xf32> -> vector<8x128xf32>
    %262 = arith.addf %258, %261 : vector<8x128xf32>
    %263 = arith.negf %262 : vector<8x128xf32>
    %264 = math.exp %263 : vector<8x128xf32>
    %cst_125 = arith.constant 1.000000e+00 : f32
    %265 = vector.broadcast %cst_125 : f32 to vector<8x128xf32>
    %266 = arith.addf %265, %264 : vector<8x128xf32>
    %267 = arith.divf %265, %266 : vector<8x128xf32>
    %268 = math.tanh %262 : vector<8x128xf32>
    %269 = vector.extract_strided_slice %267 {offsets = [0, 0], sizes = [8, 32], strides = [1, 1]} : vector<8x128xf32> to vector<8x32xf32>
    %270 = vector.extract_strided_slice %267 {offsets = [0, 32], sizes = [8, 32], strides = [1, 1]} : vector<8x128xf32> to vector<8x32xf32>
    %271 = vector.extract_strided_slice %268 {offsets = [0, 64], sizes = [8, 32], strides = [1, 1]} : vector<8x128xf32> to vector<8x32xf32>
    %272 = vector.extract_strided_slice %267 {offsets = [0, 96], sizes = [8, 32], strides = [1, 1]} : vector<8x128xf32> to vector<8x32xf32>
    %273 = arith.mulf %270, %228 : vector<8x32xf32>
    %274 = arith.mulf %269, %271 : vector<8x32xf32>
    %275 = arith.addf %273, %274 : vector<8x32xf32>
    %276 = math.tanh %275 : vector<8x32xf32>
    %277 = arith.mulf %272, %276 : vector<8x32xf32>
    %c0_126 = arith.constant 0 : index
    %c0_127 = arith.constant 0 : index
    %c0_128 = arith.constant 0 : index
    %278 = vector.load %arg5[%c0_126, %c0_127, %c0_128] : memref<1x32x128xf32, #tpu.memory_space<vmem>>, vector<1x32x128xf32>
    %279 = vector.shape_cast %278 : vector<1x32x128xf32> to vector<32x128xf32>
    %cst_129 = arith.constant dense<0.000000e+00> : vector<8x128xf32>
    %280 = tpu.matmul %277, %279, %cst_129 {dimension_numbers = #tpu.dot_dimension_numbers<[1], [0], [0], [1], [0, 0, 1, 1], [], []>} : vector<8x32xf32>, vector<32x128xf32>, vector<8x128xf32> -> vector<8x128xf32>
    %c1_130 = arith.constant 1 : index
    %c0_131 = arith.constant 0 : index
    %c0_132 = arith.constant 0 : index
    %281 = vector.load %arg4[%c1_130, %c0_131, %c0_132] : memref<2x32x128xf32, #tpu.memory_space<vmem>>, vector<1x32x128xf32>
    %282 = vector.shape_cast %281 : vector<1x32x128xf32> to vector<32x128xf32>
    %cst_133 = arith.constant dense<0.000000e+00> : vector<8x128xf32>
    %283 = tpu.matmul %256, %282, %cst_133 {dimension_numbers = #tpu.dot_dimension_numbers<[1], [0], [0], [1], [0, 0, 1, 1], [], []>} : vector<8x32xf32>, vector<32x128xf32>, vector<8x128xf32> -> vector<8x128xf32>
    %284 = arith.addf %280, %283 : vector<8x128xf32>
    %c0_134 = arith.constant 0 : index
    %c0_135 = arith.constant 0 : index
    %c0_136 = arith.constant 0 : index
    %285 = vector.load %arg6[%c0_134, %c0_135, %c0_136] : memref<1x1x128xf32, #tpu.memory_space<vmem>>, vector<1x1x128xf32>
    %286 = vector.shape_cast %285 : vector<1x1x128xf32> to vector<1x128xf32>
    %287 = vector.broadcast %286 : vector<1x128xf32> to vector<8x128xf32>
    %288 = arith.addf %284, %287 : vector<8x128xf32>
    %289 = arith.negf %288 : vector<8x128xf32>
    %290 = math.exp %289 : vector<8x128xf32>
    %cst_137 = arith.constant 1.000000e+00 : f32
    %291 = vector.broadcast %cst_137 : f32 to vector<8x128xf32>
    %292 = arith.addf %291, %290 : vector<8x128xf32>
    %293 = arith.divf %291, %292 : vector<8x128xf32>
    %294 = math.tanh %288 : vector<8x128xf32>
    %295 = vector.extract_strided_slice %293 {offsets = [0, 0], sizes = [8, 32], strides = [1, 1]} : vector<8x128xf32> to vector<8x32xf32>
    %296 = vector.extract_strided_slice %293 {offsets = [0, 32], sizes = [8, 32], strides = [1, 1]} : vector<8x128xf32> to vector<8x32xf32>
    %297 = vector.extract_strided_slice %294 {offsets = [0, 64], sizes = [8, 32], strides = [1, 1]} : vector<8x128xf32> to vector<8x32xf32>
    %298 = vector.extract_strided_slice %293 {offsets = [0, 96], sizes = [8, 32], strides = [1, 1]} : vector<8x128xf32> to vector<8x32xf32>
    %299 = arith.mulf %296, %254 : vector<8x32xf32>
    %300 = arith.mulf %295, %297 : vector<8x32xf32>
    %301 = arith.addf %299, %300 : vector<8x32xf32>
    %302 = math.tanh %301 : vector<8x32xf32>
    %303 = arith.mulf %298, %302 : vector<8x32xf32>
    %c40_138 = arith.constant 40 : index
    %c0_139 = arith.constant 0 : index
    %304 = vector.load %arg15[%c40_138, %c0_139] : memref<64x32xf32, #tpu.memory_space<vmem>>, vector<8x32xf32>
    tpu.vector_store %arg15[%c40_138, %c0_139], %303 {strides = array<i32>} : memref<64x32xf32, #tpu.memory_space<vmem>>, vector<8x32xf32>,
    %c48 = arith.constant 48 : index
    %c0_140 = arith.constant 0 : index
    %305 = vector.load %arg14[%c48, %c0_140] : memref<64x128xf32, #tpu.memory_space<vmem>>, vector<8x128xf32>
    %c0_141 = arith.constant 0 : index
    %c0_142 = arith.constant 0 : index
    %c0_143 = arith.constant 0 : index
    %306 = vector.load %arg4[%c0_141, %c0_142, %c0_143] : memref<2x32x128xf32, #tpu.memory_space<vmem>>, vector<1x32x128xf32>
    %307 = vector.shape_cast %306 : vector<1x32x128xf32> to vector<32x128xf32>
    %cst_144 = arith.constant dense<0.000000e+00> : vector<8x128xf32>
    %308 = tpu.matmul %277, %307, %cst_144 {dimension_numbers = #tpu.dot_dimension_numbers<[1], [0], [0], [1], [0, 0, 1, 1], [], []>} : vector<8x32xf32>, vector<32x128xf32>, vector<8x128xf32> -> vector<8x128xf32>
    %309 = arith.addf %305, %308 : vector<8x128xf32>
    %310 = arith.negf %309 : vector<8x128xf32>
    %311 = math.exp %310 : vector<8x128xf32>
    %cst_145 = arith.constant 1.000000e+00 : f32
    %312 = vector.broadcast %cst_145 : f32 to vector<8x128xf32>
    %313 = arith.addf %312, %311 : vector<8x128xf32>
    %314 = arith.divf %312, %313 : vector<8x128xf32>
    %315 = math.tanh %309 : vector<8x128xf32>
    %316 = vector.extract_strided_slice %314 {offsets = [0, 0], sizes = [8, 32], strides = [1, 1]} : vector<8x128xf32> to vector<8x32xf32>
    %317 = vector.extract_strided_slice %314 {offsets = [0, 32], sizes = [8, 32], strides = [1, 1]} : vector<8x128xf32> to vector<8x32xf32>
    %318 = vector.extract_strided_slice %315 {offsets = [0, 64], sizes = [8, 32], strides = [1, 1]} : vector<8x128xf32> to vector<8x32xf32>
    %319 = vector.extract_strided_slice %314 {offsets = [0, 96], sizes = [8, 32], strides = [1, 1]} : vector<8x128xf32> to vector<8x32xf32>
    %320 = arith.mulf %317, %275 : vector<8x32xf32>
    %321 = arith.mulf %316, %318 : vector<8x32xf32>
    %322 = arith.addf %320, %321 : vector<8x32xf32>
    %323 = math.tanh %322 : vector<8x32xf32>
    %324 = arith.mulf %319, %323 : vector<8x32xf32>
    %c0_146 = arith.constant 0 : index
    %c0_147 = arith.constant 0 : index
    %c0_148 = arith.constant 0 : index
    %325 = vector.load %arg5[%c0_146, %c0_147, %c0_148] : memref<1x32x128xf32, #tpu.memory_space<vmem>>, vector<1x32x128xf32>
    %326 = vector.shape_cast %325 : vector<1x32x128xf32> to vector<32x128xf32>
    %cst_149 = arith.constant dense<0.000000e+00> : vector<8x128xf32>
    %327 = tpu.matmul %324, %326, %cst_149 {dimension_numbers = #tpu.dot_dimension_numbers<[1], [0], [0], [1], [0, 0, 1, 1], [], []>} : vector<8x32xf32>, vector<32x128xf32>, vector<8x128xf32> -> vector<8x128xf32>
    %c1_150 = arith.constant 1 : index
    %c0_151 = arith.constant 0 : index
    %c0_152 = arith.constant 0 : index
    %328 = vector.load %arg4[%c1_150, %c0_151, %c0_152] : memref<2x32x128xf32, #tpu.memory_space<vmem>>, vector<1x32x128xf32>
    %329 = vector.shape_cast %328 : vector<1x32x128xf32> to vector<32x128xf32>
    %cst_153 = arith.constant dense<0.000000e+00> : vector<8x128xf32>
    %330 = tpu.matmul %303, %329, %cst_153 {dimension_numbers = #tpu.dot_dimension_numbers<[1], [0], [0], [1], [0, 0, 1, 1], [], []>} : vector<8x32xf32>, vector<32x128xf32>, vector<8x128xf32> -> vector<8x128xf32>
    %331 = arith.addf %327, %330 : vector<8x128xf32>
    %c0_154 = arith.constant 0 : index
    %c0_155 = arith.constant 0 : index
    %c0_156 = arith.constant 0 : index
    %332 = vector.load %arg6[%c0_154, %c0_155, %c0_156] : memref<1x1x128xf32, #tpu.memory_space<vmem>>, vector<1x1x128xf32>
    %333 = vector.shape_cast %332 : vector<1x1x128xf32> to vector<1x128xf32>
    %334 = vector.broadcast %333 : vector<1x128xf32> to vector<8x128xf32>
    %335 = arith.addf %331, %334 : vector<8x128xf32>
    %336 = arith.negf %335 : vector<8x128xf32>
    %337 = math.exp %336 : vector<8x128xf32>
    %cst_157 = arith.constant 1.000000e+00 : f32
    %338 = vector.broadcast %cst_157 : f32 to vector<8x128xf32>
    %339 = arith.addf %338, %337 : vector<8x128xf32>
    %340 = arith.divf %338, %339 : vector<8x128xf32>
    %341 = math.tanh %335 : vector<8x128xf32>
    %342 = vector.extract_strided_slice %340 {offsets = [0, 0], sizes = [8, 32], strides = [1, 1]} : vector<8x128xf32> to vector<8x32xf32>
    %343 = vector.extract_strided_slice %340 {offsets = [0, 32], sizes = [8, 32], strides = [1, 1]} : vector<8x128xf32> to vector<8x32xf32>
    %344 = vector.extract_strided_slice %341 {offsets = [0, 64], sizes = [8, 32], strides = [1, 1]} : vector<8x128xf32> to vector<8x32xf32>
    %345 = vector.extract_strided_slice %340 {offsets = [0, 96], sizes = [8, 32], strides = [1, 1]} : vector<8x128xf32> to vector<8x32xf32>
    %346 = arith.mulf %343, %301 : vector<8x32xf32>
    %347 = arith.mulf %342, %344 : vector<8x32xf32>
    %348 = arith.addf %346, %347 : vector<8x32xf32>
    %349 = math.tanh %348 : vector<8x32xf32>
    %350 = arith.mulf %345, %349 : vector<8x32xf32>
    %c48_158 = arith.constant 48 : index
    %c0_159 = arith.constant 0 : index
    %351 = vector.load %arg15[%c48_158, %c0_159] : memref<64x32xf32, #tpu.memory_space<vmem>>, vector<8x32xf32>
    tpu.vector_store %arg15[%c48_158, %c0_159], %350 {strides = array<i32>} : memref<64x32xf32, #tpu.memory_space<vmem>>, vector<8x32xf32>,
    %c56 = arith.constant 56 : index
    %c0_160 = arith.constant 0 : index
    %352 = vector.load %arg14[%c56, %c0_160] : memref<64x128xf32, #tpu.memory_space<vmem>>, vector<8x128xf32>
    %c0_161 = arith.constant 0 : index
    %c0_162 = arith.constant 0 : index
    %c0_163 = arith.constant 0 : index
    %353 = vector.load %arg4[%c0_161, %c0_162, %c0_163] : memref<2x32x128xf32, #tpu.memory_space<vmem>>, vector<1x32x128xf32>
    %354 = vector.shape_cast %353 : vector<1x32x128xf32> to vector<32x128xf32>
    %cst_164 = arith.constant dense<0.000000e+00> : vector<8x128xf32>
    %355 = tpu.matmul %324, %354, %cst_164 {dimension_numbers = #tpu.dot_dimension_numbers<[1], [0], [0], [1], [0, 0, 1, 1], [], []>} : vector<8x32xf32>, vector<32x128xf32>, vector<8x128xf32> -> vector<8x128xf32>
    %356 = arith.addf %352, %355 : vector<8x128xf32>
    %357 = arith.negf %356 : vector<8x128xf32>
    %358 = math.exp %357 : vector<8x128xf32>
    %cst_165 = arith.constant 1.000000e+00 : f32
    %359 = vector.broadcast %cst_165 : f32 to vector<8x128xf32>
    %360 = arith.addf %359, %358 : vector<8x128xf32>
    %361 = arith.divf %359, %360 : vector<8x128xf32>
    %362 = math.tanh %356 : vector<8x128xf32>
    %363 = vector.extract_strided_slice %361 {offsets = [0, 0], sizes = [8, 32], strides = [1, 1]} : vector<8x128xf32> to vector<8x32xf32>
    %364 = vector.extract_strided_slice %361 {offsets = [0, 32], sizes = [8, 32], strides = [1, 1]} : vector<8x128xf32> to vector<8x32xf32>
    %365 = vector.extract_strided_slice %362 {offsets = [0, 64], sizes = [8, 32], strides = [1, 1]} : vector<8x128xf32> to vector<8x32xf32>
    %366 = vector.extract_strided_slice %361 {offsets = [0, 96], sizes = [8, 32], strides = [1, 1]} : vector<8x128xf32> to vector<8x32xf32>
    %367 = arith.mulf %364, %322 : vector<8x32xf32>
    %368 = arith.mulf %363, %365 : vector<8x32xf32>
    %369 = arith.addf %367, %368 : vector<8x32xf32>
    %370 = math.tanh %369 : vector<8x32xf32>
    %371 = arith.mulf %366, %370 : vector<8x32xf32>
    %c0_166 = arith.constant 0 : index
    %c0_167 = arith.constant 0 : index
    %c0_168 = arith.constant 0 : index
    %372 = vector.load %arg5[%c0_166, %c0_167, %c0_168] : memref<1x32x128xf32, #tpu.memory_space<vmem>>, vector<1x32x128xf32>
    %373 = vector.shape_cast %372 : vector<1x32x128xf32> to vector<32x128xf32>
    %cst_169 = arith.constant dense<0.000000e+00> : vector<8x128xf32>
    %374 = tpu.matmul %371, %373, %cst_169 {dimension_numbers = #tpu.dot_dimension_numbers<[1], [0], [0], [1], [0, 0, 1, 1], [], []>} : vector<8x32xf32>, vector<32x128xf32>, vector<8x128xf32> -> vector<8x128xf32>
    %c1_170 = arith.constant 1 : index
    %c0_171 = arith.constant 0 : index
    %c0_172 = arith.constant 0 : index
    %375 = vector.load %arg4[%c1_170, %c0_171, %c0_172] : memref<2x32x128xf32, #tpu.memory_space<vmem>>, vector<1x32x128xf32>
    %376 = vector.shape_cast %375 : vector<1x32x128xf32> to vector<32x128xf32>
    %cst_173 = arith.constant dense<0.000000e+00> : vector<8x128xf32>
    %377 = tpu.matmul %350, %376, %cst_173 {dimension_numbers = #tpu.dot_dimension_numbers<[1], [0], [0], [1], [0, 0, 1, 1], [], []>} : vector<8x32xf32>, vector<32x128xf32>, vector<8x128xf32> -> vector<8x128xf32>
    %378 = arith.addf %374, %377 : vector<8x128xf32>
    %c0_174 = arith.constant 0 : index
    %c0_175 = arith.constant 0 : index
    %c0_176 = arith.constant 0 : index
    %379 = vector.load %arg6[%c0_174, %c0_175, %c0_176] : memref<1x1x128xf32, #tpu.memory_space<vmem>>, vector<1x1x128xf32>
    %380 = vector.shape_cast %379 : vector<1x1x128xf32> to vector<1x128xf32>
    %381 = vector.broadcast %380 : vector<1x128xf32> to vector<8x128xf32>
    %382 = arith.addf %378, %381 : vector<8x128xf32>
    %383 = arith.negf %382 : vector<8x128xf32>
    %384 = math.exp %383 : vector<8x128xf32>
    %cst_177 = arith.constant 1.000000e+00 : f32
    %385 = vector.broadcast %cst_177 : f32 to vector<8x128xf32>
    %386 = arith.addf %385, %384 : vector<8x128xf32>
    %387 = arith.divf %385, %386 : vector<8x128xf32>
    %388 = math.tanh %382 : vector<8x128xf32>
    %389 = vector.extract_strided_slice %387 {offsets = [0, 0], sizes = [8, 32], strides = [1, 1]} : vector<8x128xf32> to vector<8x32xf32>
    %390 = vector.extract_strided_slice %387 {offsets = [0, 32], sizes = [8, 32], strides = [1, 1]} : vector<8x128xf32> to vector<8x32xf32>
    %391 = vector.extract_strided_slice %388 {offsets = [0, 64], sizes = [8, 32], strides = [1, 1]} : vector<8x128xf32> to vector<8x32xf32>
    %392 = vector.extract_strided_slice %387 {offsets = [0, 96], sizes = [8, 32], strides = [1, 1]} : vector<8x128xf32> to vector<8x32xf32>
    %393 = arith.mulf %390, %348 : vector<8x32xf32>
    %394 = arith.mulf %389, %391 : vector<8x32xf32>
    %395 = arith.addf %393, %394 : vector<8x32xf32>
    %396 = math.tanh %395 : vector<8x32xf32>
    %397 = arith.mulf %392, %396 : vector<8x32xf32>
    %c56_178 = arith.constant 56 : index
    %c0_179 = arith.constant 0 : index
    %398 = vector.load %arg15[%c56_178, %c0_179] : memref<64x32xf32, #tpu.memory_space<vmem>>, vector<8x32xf32>
    tpu.vector_store %arg15[%c56_178, %c0_179], %397 {strides = array<i32>} : memref<64x32xf32, #tpu.memory_space<vmem>>, vector<8x32xf32>,
    %c0_180 = arith.constant 0 : index
    %c0_181 = arith.constant 0 : index
    %c0_182 = arith.constant 0 : index
    %399 = vector.load %arg12[%c0_180, %c0_181, %c0_182] : memref<2x8x32xf32, #tpu.memory_space<vmem>>, vector<1x8x32xf32>
    %400 = vector.shape_cast %399 : vector<1x8x32xf32> to vector<8x32xf32>
    %401 = vector.shape_cast %371 : vector<8x32xf32> to vector<1x8x32xf32>
    tpu.vector_store %arg12[%c0_180, %c0_181, %c0_182], %401 {strides = array<i32>} : memref<2x8x32xf32, #tpu.memory_space<vmem>>, vector<1x8x32xf32>,
    %c0_183 = arith.constant 0 : index
    %c0_184 = arith.constant 0 : index
    %c0_185 = arith.constant 0 : index
    %402 = vector.load %arg13[%c0_183, %c0_184, %c0_185] : memref<2x8x32xf32, #tpu.memory_space<vmem>>, vector<1x8x32xf32>
    %403 = vector.shape_cast %402 : vector<1x8x32xf32> to vector<8x32xf32>
    %404 = vector.shape_cast %369 : vector<8x32xf32> to vector<1x8x32xf32>
    tpu.vector_store %arg13[%c0_183, %c0_184, %c0_185], %404 {strides = array<i32>} : memref<2x8x32xf32, #tpu.memory_space<vmem>>, vector<1x8x32xf32>,
    %c1_186 = arith.constant 1 : index
    %c0_187 = arith.constant 0 : index
    %c0_188 = arith.constant 0 : index
    %405 = vector.load %arg12[%c1_186, %c0_187, %c0_188] : memref<2x8x32xf32, #tpu.memory_space<vmem>>, vector<1x8x32xf32>
    %406 = vector.shape_cast %405 : vector<1x8x32xf32> to vector<8x32xf32>
    %407 = vector.shape_cast %397 : vector<8x32xf32> to vector<1x8x32xf32>
    tpu.vector_store %arg12[%c1_186, %c0_187, %c0_188], %407 {strides = array<i32>} : memref<2x8x32xf32, #tpu.memory_space<vmem>>, vector<1x8x32xf32>,
    %c1_189 = arith.constant 1 : index
    %c0_190 = arith.constant 0 : index
    %c0_191 = arith.constant 0 : index
    %408 = vector.load %arg13[%c1_189, %c0_190, %c0_191] : memref<2x8x32xf32, #tpu.memory_space<vmem>>, vector<1x8x32xf32>
    %409 = vector.shape_cast %408 : vector<1x8x32xf32> to vector<8x32xf32>
    %410 = vector.shape_cast %395 : vector<8x32xf32> to vector<1x8x32xf32>
    tpu.vector_store %arg13[%c1_189, %c0_190, %c0_191], %410 {strides = array<i32>} : memref<2x8x32xf32, #tpu.memory_space<vmem>>, vector<1x8x32xf32>,
    %c0_192 = arith.constant 0 : index
    %c0_193 = arith.constant 0 : index
    %411 = vector.load %arg15[%c0_192, %c0_193] : memref<64x32xf32, #tpu.memory_space<vmem>>, vector<64x32xf32>
    %c0_194 = arith.constant 0 : index
    %c0_195 = arith.constant 0 : index
    %412 = vector.load %arg7[%c0_194, %c0_195] : memref<32x128xf32, #tpu.memory_space<vmem>>, vector<32x128xf32>
    %cst_196 = arith.constant dense<0.000000e+00> : vector<64x128xf32>
    %413 = tpu.matmul %411, %412, %cst_196 {dimension_numbers = #tpu.dot_dimension_numbers<[1], [0], [0], [1], [0, 0, 1, 1], [], []>} : vector<64x32xf32>, vector<32x128xf32>, vector<64x128xf32> -> vector<64x128xf32>
    %c0_197 = arith.constant 0 : index
    %c0_198 = arith.constant 0 : index
    %414 = vector.load %arg8[%c0_197, %c0_198] : memref<1x128xf32, #tpu.memory_space<vmem>>, vector<1x128xf32>
    %415 = vector.broadcast %414 : vector<1x128xf32> to vector<64x128xf32>
    %416 = arith.addf %413, %415 : vector<64x128xf32>
    %c0_199 = arith.constant 0 : index
    %c0_200 = arith.constant 0 : index
    %417 = vector.load %arg11[%c0_199, %c0_200] : memref<64x128xf32, #tpu.memory_space<vmem>>, vector<64x128xf32>
    tpu.vector_store %arg11[%c0_199, %c0_200], %416 {strides = array<i32>} : memref<64x128xf32, #tpu.memory_space<vmem>>, vector<64x128xf32>,
    return
  }
  func.func @transform_0(%arg0: i32) -> (i32, i32) {
    %c0_i32 = arith.constant 0 : i32
    %c0_i32_0 = arith.constant 0 : i32
    return %arg0, %c0_i32 : i32, i32
  }
  func.func @transform_1(%arg0: i32) -> (i32, i32) {
    %c0_i32 = arith.constant 0 : i32
    %c0_i32_0 = arith.constant 0 : i32
    %c0_i32_1 = arith.constant 0 : i32
    return %c0_i32, %c0_i32_0 : i32, i32
  }
  func.func @transform_2(%arg0: i32) -> (i32, i32) {
    %c0_i32 = arith.constant 0 : i32
    %c0_i32_0 = arith.constant 0 : i32
    %c0_i32_1 = arith.constant 0 : i32
    return %c0_i32, %c0_i32_0 : i32, i32
  }
  func.func @transform_3(%arg0: i32) -> (i32, i32, i32) {
    %c0_i32 = arith.constant 0 : i32
    %c0_i32_0 = arith.constant 0 : i32
    %c0_i32_1 = arith.constant 0 : i32
    %c0_i32_2 = arith.constant 0 : i32
    return %c0_i32, %c0_i32_0, %c0_i32_1 : i32, i32, i32
  }
  func.func @transform_4(%arg0: i32) -> (i32, i32, i32) {
    %c0_i32 = arith.constant 0 : i32
    %c0_i32_0 = arith.constant 0 : i32
    %c0_i32_1 = arith.constant 0 : i32
    %c0_i32_2 = arith.constant 0 : i32
    return %c0_i32, %c0_i32_0, %c0_i32_1 : i32, i32, i32
  }
  func.func @transform_5(%arg0: i32) -> (i32, i32, i32) {
    %c0_i32 = arith.constant 0 : i32
    %c0_i32_0 = arith.constant 0 : i32
    %c0_i32_1 = arith.constant 0 : i32
    %c0_i32_2 = arith.constant 0 : i32
    return %c0_i32, %c0_i32_0, %c0_i32_1 : i32, i32, i32
  }
  func.func @transform_6(%arg0: i32) -> (i32, i32) {
    %c0_i32 = arith.constant 0 : i32
    %c0_i32_0 = arith.constant 0 : i32
    %c0_i32_1 = arith.constant 0 : i32
    return %c0_i32, %c0_i32_0 : i32, i32
  }
  func.func @transform_7(%arg0: i32) -> (i32, i32) {
    %c0_i32 = arith.constant 0 : i32
    %c0_i32_0 = arith.constant 0 : i32
    %c0_i32_1 = arith.constant 0 : i32
    return %c0_i32, %c0_i32_0 : i32, i32
  }
  func.func @transform_8(%arg0: i32) -> (i32, i32, i32) {
    %c0_i32 = arith.constant 0 : i32
    %c0_i32_0 = arith.constant 0 : i32
    %c0_i32_1 = arith.constant 0 : i32
    %c0_i32_2 = arith.constant 0 : i32
    return %c0_i32, %c0_i32_0, %c0_i32_1 : i32, i32, i32
  }
  func.func @transform_9(%arg0: i32) -> (i32, i32, i32) {
    %c0_i32 = arith.constant 0 : i32
    %c0_i32_0 = arith.constant 0 : i32
    %c0_i32_1 = arith.constant 0 : i32
    %c0_i32_2 = arith.constant 0 : i32
    return %c0_i32, %c0_i32_0, %c0_i32_1 : i32, i32, i32
  }
  func.func @transform_10(%arg0: i32) -> (i32, i32) {
    %c0_i32 = arith.constant 0 : i32
    %c0_i32_0 = arith.constant 0 : i32
    return %arg0, %c0_i32 : i32, i32
  }
  func.func @transform_11(%arg0: i32) -> (i32, i32, i32) {
    %c0_i32 = arith.constant 0 : i32
    %c0_i32_0 = arith.constant 0 : i32
    %c0_i32_1 = arith.constant 0 : i32
    %c0_i32_2 = arith.constant 0 : i32
    return %c0_i32, %c0_i32_0, %c0_i32_1 : i32, i32, i32
  }
  func.func @transform_12(%arg0: i32) -> (i32, i32, i32) {
    %c0_i32 = arith.constant 0 : i32
    %c0_i32_0 = arith.constant 0 : i32
    %c0_i32_1 = arith.constant 0 : i32
    %c0_i32_2 = arith.constant 0 : i32
    return %c0_i32, %c0_i32_0, %c0_i32_1 : i32, i32, i32
  }
}

</mosaic_0001>

<bundles_post_ra>
// kernel: tpu_custom_call.1
= control target key start
LH: loop header
LB: loop body
LE: loop exit
PB: predicated region body
PF: predicated region fallthrough
CT: control target
= control target key end

     0   :  { %s3439_s0 = inlined_call_operand.vmem [shape: s32[256,1], index: 0, kind: input, shape index: {}]   ;;  %s3440_s1 = inlined_call_operand.vmem [shape: f32[128,128], index: 1, kind: input, shape index: {}]   ;;  %s3441_s2 = inlined_call_operand.vmem [shape: f32[1,128], index: 2, kind: input, shape index: {}]   ;;  %s3442_s3 = inlined_call_operand.vmem [shape: f32[2,32,128], index: 3, kind: input, shape index: {}]   ;;  %s3443_s4 = inlined_call_operand.vmem [shape: f32[1,32,128], index: 4, kind: input, shape index: {}]   ;;  %s3444_s5 = inlined_call_operand.vmem [shape: f32[1,1,128], index: 5, kind: input, shape index: {}]   ;;  %s3445_s6 = inlined_call_operand.vmem [shape: f32[32,128], index: 6, kind: input, shape index: {}]   ;;  %s3446_s7 = inlined_call_operand.vmem [shape: f32[1,128], index: 7, kind: input, shape index: {}]   ;;  %s3447_s8 = inlined_call_operand.hbm [shape: f32[2,8,32], index: 8, kind: input, shape index: {}]   ;;  %s3448_s9 = inlined_call_operand.hbm [shape: f32[2,8,32], index: 9, kind: input, shape index: {}]   ;;  %s3449_s10 = inlined_call_operand.hbm [shape: f32[256,128], index: 10, kind: output, shape index: {0}]   ;;  %s3450_s11 = inlined_call_operand.hbm [shape: f32[2,8,32], index: 11, kind: output, shape index: {1}]   ;;  %s3451_s12 = inlined_call_operand.hbm [shape: f32[2,8,32], index: 12, kind: output, shape index: {2}]  }
   0x1   :  { %3460 = sst [smem:[#allocation20_spill]] %s3439_s0 }
   0x2   :  { %3461 = sst [smem:[#allocation21_spill]] %s3440_s1 }
   0x3   :  { %3462 = sst [smem:[#allocation22_spill]] %s3441_s2 }
   0x4   :  { %18 = vsyncpa [#allocation5], 0 }
   0x5   :  { %19 = vsyncpa [#allocation8], 0 }
   0x6   :  { %20 = vsyncpa [#allocation6], 0 }
   0x7   :  { %22 = vsyncpa [#allocation6 + $0x1], 0 }
   0x8   :  { %23 = vsyncpa [#allocation11], 0  ;;  %s2798_s21 = smov 0   ;;  %s2800_s22 = smov 0  }
   0x9   :  { %s2802_s23 = smov 0   ;;  %s2804_s24 = smov 0  }
   0xa LB: > { %3463 = sst [smem:[#allocation17_spill]] %s2714_s23  ;;  %s2819_s25 = sadd.s32 4294967295, %s2718_s24   ;;  %s2718_s24 = sphi %s2804_s24, %s3475_s24   ;;  %s2714_s23 = sphi %s2802_s23, %s3477_s23   ;;  %s2710_s22 = sphi %s2800_s22, %s3479_s22   ;;  %s2706_s21 = sphi %s2798_s21, %s3478_s21  }
   0xb   : > { %s2178_s26 = sadd.s32 4294967294, %s2718_s24   ;;  %s2823_s27 = sadd.s32 1, %s2718_s24  }
   0xc   : > { %3464 = sst [smem:[#allocation18_spill]] %s2823_s27  ;;  %s251_s28 = sadd.s32 1, %s2714_s23 }
   0xd   : > { %s248_s29 = ssub.s32 %s2718_s24, %s2823_s27  ;;  %p261_p0 = scmp.ne.s32.totalorder %s2714_s23, %s2710_s22 }
   0xe   : > { %p249_p1 = scmp.eq.s32.totalorder %s248_s29, 0  ;;  %p262_p2 = scmp.eq.s32.totalorder %s2819_s25, 3 }
   0xf   : > { %p267_p3 = scmp.ne.s32.totalorder %s2710_s22, %s2706_s21  ;;  %p268_p4 = scmp.eq.s32.totalorder %s2178_s26, 3 }
  0x10   : > { %s2834_s30 = scalar_select %p249_p1, %s2714_s23, %s251_s28  }
  0x11   : > { %p2838_p5 = por %p262_p2, %p261_p0  ;;  %p2842_p6 = por %p268_p4, %p267_p3 }
  0x12   : > { %3465 = sst [smem:[#allocation19_spill]] %s2834_s30  ;;  %p2179_p7 = scmp.ge.s32.totalorder %s2718_s24, 1 }
  0x13   : > { %p317_p8 = scmp.lt.s32.totalorder %s2718_s24, 5  ;;  %p2180_p9 = scmp.ne.s32.totalorder %s2819_s25, 0 }
  0x14   : > { %p2333_p10 = scmp.eq.s32.totalorder %s2819_s25, 0  ;;  %s349_s18 = sshll.u32 %s3447_s8, 4  ;;  %s350_s18 = int_to_ptr.hbm [resolvable:$true] %s349_s18 }
  0x15   : > { %p2850_p11 = pnand %p2179_p7, %p317_p8  ;;  %s2720_s19 = smov [#allocation4]  }
  0x16   : > { %s351_s20 = sshll.u32 %s2720_s19, 4  ;;  %s363_s29 = sshll.u32 %s3448_s9, 4  ;;  %s352_s20 = int_to_ptr.vmem [resolvable:$true] %s351_s20  ;;  %s364_s29 = int_to_ptr.hbm [resolvable:$true] %s363_s29 }
  0x17   : > { %p2322_p12 = pneg %p2850_p11  ;;  %s2721_s30 = smov 128  }
  0x18   : > { %s2722_s23 = smov 8   ;;  %s2723_s27 = smov [#allocation7]  }
  0x19   : > { %p2323_p13 = pnand %p2333_p10, %p2322_p12  ;;  %s365_s16 = sshll.u32 %s2723_s27, 4  ;;  %s366_s16 = int_to_ptr.vmem [resolvable:$true] %s365_s16 }
  0x1a   : > { %390 = sbr.rel (%p2850_p11) target bundleno = 5532 (0x159c), region = 60 }
  0x1b   : > { %2325 = dma.hbm_to_vmem [thread:$0]  (!%p2323_p13), %s350_s18, 256, %s352_s20, [#allocation5], %s2721_s30, %s2721_s30, %s2722_s23  }
  0x1c   : > { %2328 = dma.hbm_to_vmem [thread:$0]  (!%p2323_p13), %s364_s29, 256, %s366_s16, [#allocation8], %s2721_s30, %s2721_s30, %s2722_s23  }
  0x1f   : > { %2689 = dma.done.wait (%p2333_p10), [#allocation5], 256  }
  0x20   : > { %2691 = vsyncadd (%p2333_p10), [#allocation5], 4294967040 }
  0x21   : > { %2693 = dma.done.wait (%p2333_p10), [#allocation8], 256  }
  0x22   : > { %2695 = vsyncadd (%p2333_p10), [#allocation8], 4294967040  ;;  %s3455_s27 = sand.u32 1, %s2710_s22   ;;  %s2187_s23 = sshll.u32 %s2819_s25, 3 }
  0x23   : > { %s2186_s30 = sshll.u32 %s3455_s27, 6  ;;  %p439_p0 = scmp.lt.s32.totalorder %s2187_s23, 31 }
  0x24   : > { %s3469_s0 = sld [smem:[#allocation20_spill]]  ;;  %s2883_s20 = scalar_lea.vmem [#allocation9], %s2186_s30 }
  0x25   : > { %s3481_s23 = smov (!%p439_p0, %s2187_s23), 31 }
  0x26   : > { %s2188_s15 = sshll.u32 %s3481_s23, 3  ;;  %448 = sbr.rel (%p2180_p9) target bundleno = 48 (0x30), region = 72 }
  0x2a   : > { %s2881_s19 = scalar_lea.vmem %s3469_s0, %s2188_s15 }
  0x2b   : > { %v449_v0 = vld [vmem:[#allocation4] sm:$0xff]  ;;  %vm451_vm0 = vcmask 261120   ;;  %v450_v1 = vld [vmem:[#allocation4 + $0x8] sm:$0xff]  ;;  %v454_v2 = vld [vmem:[#allocation7] sm:$0xff] }
  0x2c   : > { %452 = vst.msk [vmem:[#allocation10] sm:$0xff] %vm451_vm0, %v449_v0  ;;  %v455_v3 = vld [vmem:[#allocation7 + $0x8] sm:$0xff] }
  0x2d   : > { %453 = vst.msk [vmem:[#allocation10 + $0x8] sm:$0xff] %vm451_vm0, %v450_v1 }
  0x2e   : > { %456 = vst.msk [vmem:[#allocation12] sm:$0xff] %vm451_vm0, %v454_v2 }
  0x2f   : > { %457 = vst.msk [vmem:[#allocation12 + $0x8] sm:$0xff] %vm451_vm0, %v455_v3 }
  0x30 PF: > { %v458_v4 = vld [vmem:[%s2881_s19] sm:$0xff]  ;;  %s3470_s1 = sld [smem:[#allocation21_spill]]  ;;  %v2724_v7 = vmov 0   ;;  %v2906_v11 = vld [vmem:[%s3442_s3 + $0x18] sm:$0xff]  ;;  %v2911_v12 = vld [vmem:[%s3442_s3 + $0x10] sm:$0xff]  ;;  %vm596_vm1 = vcmask 261120   ;;  %v466_v28 = vlaneseq }
  0x31   : > { %2387 = vset.pattern.permute.xlu0 %v2724_v7  ;;  %2388 = vset.pattern.permute.xlu1 %v2724_v7  ;;  %v2951_v24 = vld [vmem:[%s3442_s3 + $0x8] sm:$0xff]  ;;  %v2957_v25 = vld [vmem:[%s3442_s3] sm:$0xff]  ;;  %s3458_s27 = smov 32   ;;  %v2726_v31 = vmov 1.0   ;;  %s3471_s2 = sld [smem:[#allocation22_spill]]  ;;  %v2992_v60 = vld [vmem:[%s3442_s3 + $0x38] sm:$0xff] }
  0x32   : > { %469 = vperm.xlu0 %2387, %v458_v4   ;;  %612 = vmatpush.msra.mxu1 %v2906_v11  ;;  %v2970_v29 = vand.u32 127, %v466_v28  ;;  %s3456_s16 = smov 64   ;;  %v459_v38 = vld [vmem:[%s2881_s19 + $0x8] sm:$0xff]  ;;  %v2997_v61 = vld [vmem:[%s3443_s4 + $0x18] sm:$0xff]  ;;  %v3002_v62 = vld [vmem:[%s3442_s3 + $0x30] sm:$0xff]  ;;  %s3472_s23 = smov 64  }
  0x33   : > { %v585_v26 = vld [vmem:[#allocation10] sm:$0xff]  ;;  %686 = vmatpush.msra.mxu2 %v2992_v60  ;;  %711 = vmatpush.msra.mxu3 %v2997_v61  ;;  %v3009_v63 = vld [vmem:[%s3443_s4 + $0x10] sm:$0xff]  ;;  %v3014_v0 = vld [vmem:[%s3442_s3 + $0x28] sm:$0xff]  ;;  %s3473_s30 = smov 32   ;;  %s2728_s28 = smov 96  }
  0x34   : > { %613 = vmatpush.msra.mxu1 %v2911_v12  ;;  %v3019_v1 = vld [vmem:[%s3443_s4 + $0x8] sm:$0xff]  ;;  %v3026_v2 = vld [vmem:[%s3442_s3 + $0x20] sm:$0xff]  ;;  %s2731_s18 = smov 8   ;;  %s2295_s15 = sshll.u32 %s2819_s25, 6 }
  0x35   : > { %v588_v27 = vld [vmem:[#allocation12] sm:$0xff]  ;;  %687 = vmatpush.msra.mxu2 %v3002_v62  ;;  %712 = vmatpush.msra.mxu3 %v3009_v63  ;;  %v3031_v3 = vld [vmem:[%s3443_s4] sm:$0xff]  ;;  %s3474_s26 = sand.u32 1, %s2710_s22  }
  0x36   : > { %v531_v5 = vld [vmem:[%s3470_s1 + $0x78] sm:$0xff]  ;;  %v530_v6 = vld [vmem:[%s3470_s1 + $0x70] sm:$0xff]  ;;  %v529_v8 = vld [vmem:[%s3470_s1 + $0x68] sm:$0xff]  ;;  %614 = vmatpush.msra.mxu1 %v2951_v24  ;;  %642 = vrot.lane.b32.xlu1 %v588_v27, %s3458_s27 }
  0x37   : > { %536 = vmatpush.msra.mxu0 %v531_v5  ;;  %v528_v9 = vld [vmem:[%s3470_s1 + $0x60] sm:$0xff]  ;;  %v527_v10 = vld [vmem:[%s3470_s1 + $0x58] sm:$0xff]  ;;  %v526_v13 = vld [vmem:[%s3470_s1 + $0x50] sm:$0xff]  ;;  %688 = vmatpush.msra.mxu2 %v3014_v0 }
  0x38   : > { %v525_v14 = vld [vmem:[%s3470_s1 + $0x48] sm:$0xff]  ;;  %v524_v15 = vld [vmem:[%s3470_s1 + $0x40] sm:$0xff]  ;;  %v523_v16 = vld [vmem:[%s3470_s1 + $0x38] sm:$0xff]  ;;  %615 = vmatpush.msra.mxu1 %v2957_v25  ;;  %713 = vmatpush.msra.mxu3 %v3019_v1 }
  0x39   : > { %537 = vmatpush.msra.mxu0 %v530_v6  ;;  %v522_v17 = vld [vmem:[%s3470_s1 + $0x30] sm:$0xff]  ;;  %v521_v18 = vld [vmem:[%s3470_s1 + $0x28] sm:$0xff]  ;;  %v520_v19 = vld [vmem:[%s3470_s1 + $0x20] sm:$0xff]  ;;  %2206 = vmatmul.msk.f32.vlgmr.msra.gmra.mxu1 %vm596_vm1, %v585_v26 }
  0x3a   : > { %v519_v20 = vld [vmem:[%s3470_s1 + $0x18] sm:$0xff]  ;;  %v518_v21 = vld [vmem:[%s3470_s1 + $0x10] sm:$0xff]  ;;  %v517_v22 = vld [vmem:[%s3470_s1 + $0x8] sm:$0xff]  ;;  %787 = vmatpush.msrb.mxu1 %v2906_v11  ;;  %689 = vmatpush.msra.mxu2 %v3026_v2 }
  0x3b   : > { %538 = vmatpush.msra.mxu0 %v529_v8  ;;  %v516_v23 = vld [vmem:[%s3470_s1] sm:$0xff]  ;;  %714 = vmatpush.msra.mxu3 %v3031_v3  ;;  %v587_v6 = vld [vmem:[#allocation10 + $0x8] sm:$0xff]  ;;  %v590_v7 = vld [vmem:[#allocation12 + $0x8] sm:$0xff] }
  0x3c   : > { %788 = vmatpush.msrb.mxu1 %v2911_v12  ;;  %v2977_v32 = vld [vmem:[%s3471_s2] ss:$0 sm:$0xff]  ;;  %855 = vmatpush.msrb.mxu2 %v2992_v60 }
  0x3d   : > { %539 = vmatpush.msra.mxu0 %v528_v9  ;;  %880 = vmatpush.msrb.mxu3 %v2997_v61 }
  0x3e   : > { %789 = vmatpush.msrb.mxu1 %v2951_v24  ;;  %856 = vmatpush.msrb.mxu2 %v3002_v62 }
  0x3f   : > { %540 = vmatpush.msra.mxu0 %v527_v10  ;;  %881 = vmatpush.msrb.mxu3 %v3009_v63 }
  0x40   : > { %790 = vmatpush.msrb.mxu1 %v2957_v25  ;;  %857 = vmatpush.msrb.mxu2 %v3014_v0 }
  0x41   : > { %541 = vmatpush.msra.mxu0 %v526_v13  ;;  %882 = vmatpush.msrb.mxu3 %v3019_v1 }
  0x42   : > { %952 = vmatpush.msra.mxu1 %v2906_v11  ;;  %858 = vmatpush.msrb.mxu2 %v3026_v2 }
  0x43   : > { %542 = vmatpush.msra.mxu0 %v525_v14  ;;  %883 = vmatpush.msrb.mxu3 %v3031_v3 }
  0x44   : > { %953 = vmatpush.msra.mxu1 %v2911_v12  ;;  %2212 = vmatmul.msk.f32.vlgmr.msra.gmra.mxu2 %vm596_vm1, %v587_v6  ;;  %v460_v6 = vld [vmem:[%s2881_s19 + $0x10] sm:$0xff] }
  0x45   : > { %543 = vmatpush.msra.mxu0 %v524_v15  ;;  %1020 = vmatpush.msra.mxu2 %v2992_v60 }
  0x46   : > { %954 = vmatpush.msra.mxu1 %v2951_v24 }
  0x47   : > { %544 = vmatpush.msra.mxu0 %v523_v16  ;;  %1021 = vmatpush.msra.mxu2 %v3002_v62  ;;  %v2390_v16 = vld [vmem:[%s3444_s5] ss:$0 sm:$0xff] }
  0x48   : > { %955 = vmatpush.msra.mxu1 %v2957_v25 }
  0x49   : > { %545 = vmatpush.msra.mxu0 %v522_v17  ;;  %1022 = vmatpush.msra.mxu2 %v3014_v0 }
  0x4b   : > { %546 = vmatpush.msra.mxu0 %v521_v18  ;;  %1023 = vmatpush.msra.mxu2 %v3026_v2 }
  0x4d   : > { %547 = vmatpush.msra.mxu0 %v520_v19 }
  0x4f   : > { %548 = vmatpush.msra.mxu0 %v519_v20 }
  0x51   : > { %549 = vmatpush.msra.mxu0 %v518_v21 }
  0x53   : > { %550 = vmatpush.msra.mxu0 %v517_v22 }
  0x55   : > { %551 = vmatpush.msra.mxu0 %v516_v23 }
  0xa4   : > { %v470_v30 = vpop.permute.xlu0 %469 }
  0xa5   : > { %vm492_vm2 = vcmp.eq.s32.totalorder %v2970_v29, %v470_v30 }
  0xa6   : > { %2198 = vmatmul.msk.f32.vlgmr.msra.gmra.mxu0 %vm492_vm2, %v2726_v31 }
  0xa8   : > { %v643_v55 = vpop.permute.xlu1 %642 }
  0xb6   : > { %v617_v34 = vpop.f32.mrf.mxu1 }
  0xc7   : > { %v691_v15 = vpop.f32.mrf.mxu2 }
 0x123   : > { %v553_v33 = vpop.f32.mrf.mxu0 }
 0x124   : > { %v554_v35 = vadd.f32 %v2977_v32, %v553_v33 }
 0x126   : > { %v620_v36 = vadd.f32 %v617_v34, %v554_v35 }
 0x128   : > { %2399 = vtanh.f32 %v620_v36  ;;  %v2207_v39 = vmul.f32 -1.442695, %v620_v36 }
 0x12a   : > { %2401 = vpow2.f32 %v2207_v39 }
 0x12e   : > { %v2400_v37 = vpop.eup %2399 }
 0x12f   : > { %647 = vrot.lane.b32.xlu0 %v2400_v37, %s3456_s16 }
 0x130   : > { %v2402_v40 = vpop.eup %2401 }
 0x131   : > { %v624_v41 = vadd.f32 1.0, %v2402_v40 }
 0x133   : > { %2403 = vrcp.f32 %v624_v41  ;;  %v636_v47 = vand.u32 2147483648, %v624_v41  ;;  %vm630_vm4 = vweird.f32 %v624_v41  ;;  %v634_v48 = vand.u32 2147483647, %v624_v41 }
 0x135   : > { %v637_v50 = vor.u32 1.1754944e-38, %v636_v47  ;;  %vm635_vm6 = vcmp.eq.f32.partialorder %v634_v48, 8.507059e+37 }
 0x137   : > { %472 = vperm.xlu0 %2387, %v459_v38  }
 0x139   : > { %v2404_v42 = vpop.eup %2403 }
 0x13a   : > { %v626_v43 = vmul.f32 %v2404_v42, %v624_v41  ;;  %vm631_vm3 = vweird.f32 %v2404_v42 }
 0x13b   : > { %vm632_vm5 = vmor %vm630_vm4, %vm631_vm3 }
 0x13c   : > { %v627_v44 = vsub.f32 1.0, %v626_v43 }
 0x13e   : > { %v628_v45 = vmul.f32 %v2404_v42, %v627_v44 }
 0x13f   : > { %745 = vrot.lane.b32.xlu0 %v590_v7, %s3458_s27 }
 0x140   : > { %v629_v46 = vadd.f32 %v2404_v42, %v628_v45 }
 0x142   : > { %v633_v49 = vsel %vm632_vm5, %v2404_v42, %v629_v46 }
 0x143   : > { %v638_v51 = vsel %vm635_vm6, %v637_v50, %v633_v49 }
 0x144   : > { %v645_v56 = vmul.f32 %v643_v55, %v638_v51 }
 0x1a1   : > { %v648_v52 = vpop.permute.xlu0 %647 }
 0x1a2   : > { %v650_v53 = vmul.f32 %v648_v52, %v638_v51 }
 0x1a4   : > { %652 = vrot.lane.b32.xlu1 %v650_v53, %s3458_s27 }
 0x1a9   : > { %v473_v54 = vpop.permute.xlu0 %472 }
 0x1aa   : > { %vm493_vm7 = vcmp.eq.s32.totalorder %v2970_v29, %v473_v54 }
 0x1ab   : > { %2199 = vmatmul.msk.f32.gmra.mxu0 %vm493_vm7, %v2726_v31 }
 0x1b1   : > { %v746_v7 = vpop.permute.xlu0 %745 }
 0x216   : > { %v653_v57 = vpop.permute.xlu1 %652 }
 0x217   : > { %v2985_v58 = vadd.f32 %v653_v57, %v645_v56 }
 0x219   : > { %2405 = vtanh.f32 %v2985_v58 }
 0x21f   : > { %v2406_v59 = vpop.eup %2405 }
 0x220   : > { %658 = vrot.lane.b32.xlu2 %v2406_v59, %s3456_s16 }
 0x228   : > { %v556_v9 = vpop.f32.mrf.mxu0 }
 0x229   : > { %v557_v10 = vadd.f32 %v2977_v32, %v556_v9 }
 0x27a   : > { %v659_v4 = vpop.permute.xlu2 %658 }
 0x27b   : > { %v661_v5 = vmul.f32 %v659_v4, %v638_v51 }
 0x27d   : > { %695 = vrot.lane.b32.xlu2 %v661_v5, %s3458_s27 }
 0x2d7   : > { %v696_v8 = vpop.permute.xlu2 %695 }
 0x2d8   : > { %2213 = vmatmul.msk.f32.vlgmr.msra.gmra.mxu3 %vm596_vm1, %v696_v8  ;;  %2215 = vmatmul.msk.f32.vlgmr.msrb.gmra.mxu1 %vm596_vm1, %v696_v8 }
 0x2d9   : > { %1117 = vmatpush.msrb.mxu1 %v2906_v11  ;;  %1045 = vmatpush.msra.mxu3 %v2997_v61 }
 0x2db   : > { %1118 = vmatpush.msrb.mxu1 %v2911_v12  ;;  %1046 = vmatpush.msra.mxu3 %v3009_v63 }
 0x2dd   : > { %1119 = vmatpush.msrb.mxu1 %v2951_v24  ;;  %1047 = vmatpush.msra.mxu3 %v3019_v1 }
 0x2df   : > { %1120 = vmatpush.msrb.mxu1 %v2957_v25  ;;  %1048 = vmatpush.msra.mxu3 %v3031_v3 }
 0x355   : > { %v792_v13 = vpop.f32.mrf.mxu1 }
 0x356   : > { %v795_v14 = vadd.f32 %v792_v13, %v557_v10 }
 0x358   : > { %2407 = vtanh.f32 %v795_v14  ;;  %v2216_v22 = vmul.f32 -1.442695, %v795_v14 }
 0x35b   : > { %v716_v17 = vpop.f32.mrf.mxu3 }
 0x35c   : > { %v717_v18 = vadd.f32 %v716_v17, %v691_v15 }
 0x35e   : > { %v2408_v19 = vpop.eup %2407  ;;  %v723_v20 = vadd.f32 %v2390_v16, %v717_v18 }
 0x35f   : > { %818 = vrot.lane.b32.xlu2 %v2408_v19, %s3456_s16 }
 0x360   : > { %2409 = vtanh.f32 %v723_v20  ;;  %v2214_v33 = vmul.f32 -1.442695, %v723_v20 }
 0x361   : > { %2411 = vpow2.f32 %v2216_v22 }
 0x366   : > { %v2410_v21 = vpop.eup %2409 }
 0x367   : > { %750 = vrot.lane.b32.xlu1 %v2410_v21, %s3456_s16  ;;  %v2412_v23 = vpop.eup %2411 }
 0x368   : > { %v799_v26 = vadd.f32 1.0, %v2412_v23 }
 0x36a   : > { %2413 = vrcp.f32 %v799_v26  ;;  %v811_v36 = vand.u32 2147483648, %v799_v26  ;;  %vm805_vm9 = vweird.f32 %v799_v26  ;;  %v809_v37 = vand.u32 2147483647, %v799_v26 }
 0x36b   : > { %2415 = vpow2.f32 %v2214_v33 }
 0x36c   : > { %v812_v40 = vor.u32 1.1754944e-38, %v811_v36  ;;  %vm810_vm11 = vcmp.eq.f32.partialorder %v809_v37, 8.507059e+37 }
 0x370   : > { %v2414_v27 = vpop.eup %2413 }
 0x371   : > { %v801_v28 = vmul.f32 %v2414_v27, %v799_v26  ;;  %vm806_vm8 = vweird.f32 %v2414_v27  ;;  %v2416_v38 = vpop.eup %2415 }
 0x372   : > { %vm807_vm10 = vmor %vm805_vm9, %vm806_vm8  ;;  %v727_v41 = vadd.f32 1.0, %v2416_v38 }
 0x373   : > { %v802_v30 = vsub.f32 1.0, %v801_v28 }
 0x374   : > { %2417 = vrcp.f32 %v727_v41  ;;  %v739_v50 = vand.u32 2147483648, %v727_v41  ;;  %vm733_vm13 = vweird.f32 %v727_v41  ;;  %v737_v51 = vand.u32 2147483647, %v727_v41 }
 0x375   : > { %v803_v34 = vmul.f32 %v2414_v27, %v802_v30 }
 0x376   : > { %v740_v53 = vor.u32 1.1754944e-38, %v739_v50  ;;  %vm738_vm15 = vcmp.eq.f32.partialorder %v737_v51, 8.507059e+37 }
 0x377   : > { %v804_v35 = vadd.f32 %v2414_v27, %v803_v34 }
 0x379   : > { %v808_v39 = vsel %vm807_vm10, %v2414_v27, %v804_v35  ;;  %v2391_v27 = vld [vmem:[%s3444_s5] ss:$0 sm:$0xff] }
 0x37a   : > { %v813_v43 = vsel %vm810_vm11, %v812_v40, %v808_v39  ;;  %v2418_v45 = vpop.eup %2417 }
 0x37b   : > { %v729_v46 = vmul.f32 %v2418_v45, %v727_v41  ;;  %vm734_vm12 = vweird.f32 %v2418_v45  ;;  %v816_v57 = vmul.f32 %v813_v43, %v2985_v58 }
 0x37c   : > { %vm735_vm14 = vmor %vm733_vm13, %vm734_vm12 }
 0x37d   : > { %v730_v47 = vsub.f32 1.0, %v729_v46 }
 0x37f   : > { %v731_v48 = vmul.f32 %v2418_v45, %v730_v47 }
 0x381   : > { %v732_v49 = vadd.f32 %v2418_v45, %v731_v48 }
 0x383   : > { %v736_v52 = vsel %vm735_vm14, %v2418_v45, %v732_v49 }
 0x384   : > { %v741_v54 = vsel %vm738_vm15, %v740_v53, %v736_v52 }
 0x385   : > { %v748_v8 = vmul.f32 %v746_v7, %v741_v54 }
 0x3b9   : > { %v819_v42 = vpop.permute.xlu2 %818 }
 0x3ba   : > { %v821_v44 = vmul.f32 %v819_v42, %v813_v43 }
 0x3bc   : > { %823 = vrot.lane.b32.xlu2 %v821_v44, %s3458_s27 }
 0x3d9   : > { %v751_v55 = vpop.permute.xlu1 %750 }
 0x3da   : > { %v753_v56 = vmul.f32 %v751_v55, %v741_v54 }
 0x3dc   : > { %755 = vrot.lane.b32.xlu1 %v753_v56, %s3458_s27 }
 0x416   : > { %v824_v59 = vpop.permute.xlu2 %823 }
 0x417   : > { %v3071_v4 = vadd.f32 %v824_v59, %v816_v57 }
 0x419   : > { %2419 = vtanh.f32 %v3071_v4 }
 0x41f   : > { %v2420_v5 = vpop.eup %2419 }
 0x420   : > { %829 = vrot.lane.b32.xlu1 %v2420_v5, %s3456_s16 }
 0x428   : > { %475 = vperm.xlu1 %2388, %v460_v6  }
 0x44e   : > { %v756_v9 = vpop.permute.xlu1 %755 }
 0x44f   : > { %v3076_v10 = vadd.f32 %v756_v9, %v748_v8 }
 0x451   : > { %2421 = vtanh.f32 %v3076_v10 }
 0x457   : > { %v2422_v13 = vpop.eup %2421 }
 0x458   : > { %761 = vrot.lane.b32.xlu0 %v2422_v13, %s3456_s16 }
 0x492   : > { %v830_v58 = vpop.permute.xlu1 %829 }
 0x493   : > { %v832_v14 = vmul.f32 %v830_v58, %v813_v43 }
 0x495   : > { %864 = vrot.lane.b32.xlu0 %v832_v14, %s3458_s27 }
 0x49a   : > { %v476_v15 = vpop.permute.xlu1 %475 }
 0x49b   : > { %vm494_vm0 = vcmp.eq.s32.totalorder %v2970_v29, %v476_v15 }
 0x49c   : > { %2200 = vmatmul.msk.f32.gmra.mxu0 %vm494_vm0, %v2726_v31 }
 0x4ca   : > { %v762_v16 = vpop.permute.xlu0 %761 }
 0x4cb   : > { %v764_v17 = vmul.f32 %v762_v16, %v741_v54 }
 0x4cd   : > { %766 = vrot.lane.b32.xlu2 %v764_v17, %s3458_s27 }
 0x507   : > { %v865_v18 = vpop.permute.xlu0 %864 }
 0x508   : > { %2222 = vmatmul.msk.f32.vlgmr.msrb.gmra.mxu3 %vm596_vm1, %v865_v18  ;;  %2224 = vmatmul.msk.f32.vlgmr.msra.gmra.mxu1 %vm596_vm1, %v865_v18  ;;  %v461_v18 = vld [vmem:[%s2881_s19 + $0x18] sm:$0xff] }
 0x509   : > { %1282 = vmatpush.msra.mxu1 %v2906_v11  ;;  %1210 = vmatpush.msrb.mxu3 %v2997_v61 }
 0x50b   : > { %1283 = vmatpush.msra.mxu1 %v2911_v12  ;;  %1211 = vmatpush.msrb.mxu3 %v3009_v63 }
 0x50d   : > { %1284 = vmatpush.msra.mxu1 %v2951_v24  ;;  %1212 = vmatpush.msrb.mxu3 %v3019_v1 }
 0x50f   : > { %1285 = vmatpush.msra.mxu1 %v2957_v25  ;;  %1213 = vmatpush.msrb.mxu3 %v3031_v3 }
 0x519   : > { %v559_v20 = vpop.f32.mrf.mxu0 }
 0x51a   : > { %v560_v21 = vadd.f32 %v2977_v32, %v559_v20 }
 0x527   : > { %v767_v19 = vpop.permute.xlu2 %766 }
 0x528   : > { %769 = vst.msk [vmem:[#allocation3] sm:$0xff] %vm596_vm1, %v767_v19  ;;  %2221 = vmatmul.msk.f32.vlgmr.msrb.gmra.mxu2 %vm596_vm1, %v767_v19 }
 0x529   : > { %1185 = vmatpush.msrb.mxu2 %v2992_v60 }
 0x52b   : > { %1186 = vmatpush.msrb.mxu2 %v3002_v62 }
 0x52d   : > { %1187 = vmatpush.msrb.mxu2 %v3014_v0 }
 0x52f   : > { %1188 = vmatpush.msrb.mxu2 %v3026_v2 }
 0x585   : > { %v957_v22 = vpop.f32.mrf.mxu1 }
 0x586   : > { %v960_v23 = vadd.f32 %v957_v22, %v560_v21 }
 0x588   : > { %2423 = vtanh.f32 %v960_v23  ;;  %v2225_v36 = vmul.f32 -1.442695, %v960_v23 }
 0x58b   : > { %v885_v28 = vpop.f32.mrf.mxu3 }
 0x58e   : > { %v2424_v26 = vpop.eup %2423 }
 0x58f   : > { %983 = vrot.lane.b32.xlu0 %v2424_v26, %s3456_s16 }
 0x5ab   : > { %v860_v30 = vpop.f32.mrf.mxu2 }
 0x5ac   : > { %v886_v33 = vadd.f32 %v885_v28, %v860_v30 }
 0x5ae   : > { %v892_v34 = vadd.f32 %v2391_v27, %v886_v33 }
 0x5b0   : > { %2425 = vtanh.f32 %v892_v34  ;;  %v2223_v39 = vmul.f32 -1.442695, %v892_v34 }
 0x5b1   : > { %2427 = vpow2.f32 %v2225_v36 }
 0x5b6   : > { %v2426_v35 = vpop.eup %2425 }
 0x5b7   : > { %915 = vrot.lane.b32.xlu2 %v2426_v35, %s3456_s16  ;;  %v2428_v37 = vpop.eup %2427 }
 0x5b8   : > { %v964_v38 = vadd.f32 1.0, %v2428_v37 }
 0x5ba   : > { %2429 = vrcp.f32 %v964_v38  ;;  %v976_v48 = vand.u32 2147483648, %v964_v38  ;;  %vm970_vm3 = vweird.f32 %v964_v38  ;;  %v974_v49 = vand.u32 2147483647, %v964_v38 }
 0x5bb   : > { %2431 = vpow2.f32 %v2223_v39 }
 0x5bc   : > { %v977_v52 = vor.u32 1.1754944e-38, %v976_v48  ;;  %vm975_vm5 = vcmp.eq.f32.partialorder %v974_v49, 8.507059e+37 }
 0x5c0   : > { %v2430_v40 = vpop.eup %2429 }
 0x5c1   : > { %v2432_v41 = vpop.eup %2431  ;;  %v966_v42 = vmul.f32 %v2430_v40, %v964_v38  ;;  %vm971_vm2 = vweird.f32 %v2430_v40 }
 0x5c2   : > { %v896_v43 = vadd.f32 1.0, %v2432_v41  ;;  %vm972_vm4 = vmor %vm970_vm3, %vm971_vm2 }
 0x5c3   : > { %v967_v44 = vsub.f32 1.0, %v966_v42 }
 0x5c4   : > { %2433 = vrcp.f32 %v896_v43  ;;  %v908_v5 = vand.u32 2147483648, %v896_v43  ;;  %vm902_vm7 = vweird.f32 %v896_v43  ;;  %v906_v6 = vand.u32 2147483647, %v896_v43 }
 0x5c5   : > { %v968_v45 = vmul.f32 %v2430_v40, %v967_v44 }
 0x5c6   : > { %v909_v8 = vor.u32 1.1754944e-38, %v908_v5  ;;  %vm907_vm9 = vcmp.eq.f32.partialorder %v906_v6, 8.507059e+37 }
 0x5c7   : > { %v969_v46 = vadd.f32 %v2430_v40, %v968_v45 }
 0x5c9   : > { %v973_v50 = vsel %vm972_vm4, %v2430_v40, %v969_v46 }
 0x5ca   : > { %v2434_v47 = vpop.eup %2433  ;;  %v978_v54 = vsel %vm975_vm5, %v977_v52, %v973_v50 }
 0x5cb   : > { %v898_v51 = vmul.f32 %v2434_v47, %v896_v43  ;;  %vm903_vm6 = vweird.f32 %v2434_v47  ;;  %v981_v14 = vmul.f32 %v978_v54, %v3071_v4 }
 0x5cc   : > { %vm904_vm8 = vmor %vm902_vm7, %vm903_vm6 }
 0x5cd   : > { %v899_v56 = vsub.f32 1.0, %v898_v51 }
 0x5cf   : > { %v900_v57 = vmul.f32 %v2434_v47, %v899_v56 }
 0x5d1   : > { %v901_v59 = vadd.f32 %v2434_v47, %v900_v57 }
 0x5d3   : > { %v905_v7 = vsel %vm904_vm8, %v2434_v47, %v901_v59 }
 0x5d4   : > { %v910_v13 = vsel %vm907_vm9, %v909_v8, %v905_v7 }
 0x5d5   : > { %v913_v19 = vmul.f32 %v910_v13, %v3076_v10 }
 0x601   : > { %v984_v53 = vpop.permute.xlu0 %983 }
 0x602   : > { %v986_v55 = vmul.f32 %v984_v53, %v978_v54 }
 0x604   : > { %988 = vrot.lane.b32.xlu2 %v986_v55, %s3458_s27 }
 0x611   : > { %v916_v9 = vpop.permute.xlu2 %915 }
 0x612   : > { %v918_v58 = vmul.f32 %v916_v9, %v910_v13 }
 0x614   : > { %920 = vrot.lane.b32.xlu1 %v918_v58, %s3458_s27 }
 0x65e   : > { %v989_v15 = vpop.permute.xlu2 %988 }
 0x65f   : > { %v3109_v16 = vadd.f32 %v989_v15, %v981_v14  ;;  %v462_v15 = vld [vmem:[%s2881_s19 + $0x20] sm:$0xff] }
 0x661   : > { %2435 = vtanh.f32 %v3109_v16 }
 0x667   : > { %v2436_v17 = vpop.eup %2435 }
 0x668   : > { %994 = vrot.lane.b32.xlu1 %v2436_v17, %s3456_s16 }
 0x670   : > { %478 = vperm.xlu1 %2388, %v461_v18  }
 0x686   : > { %v921_v20 = vpop.permute.xlu1 %920 }
 0x687   : > { %v3115_v21 = vadd.f32 %v921_v20, %v913_v19 }
 0x689   : > { %2437 = vtanh.f32 %v3115_v21 }
 0x68f   : > { %v2438_v22 = vpop.eup %2437 }
 0x690   : > { %926 = vrot.lane.b32.xlu0 %v2438_v22, %s3456_s16 }
 0x6da   : > { %v995_v4 = vpop.permute.xlu1 %994 }
 0x6db   : > { %v997_v23 = vmul.f32 %v995_v4, %v978_v54 }
 0x6dd   : > { %1029 = vrot.lane.b32.xlu0 %v997_v23, %s3458_s27 }
 0x6e2   : > { %v479_v26 = vpop.permute.xlu1 %478 }
 0x6e3   : > { %vm495_vm10 = vcmp.eq.s32.totalorder %v2970_v29, %v479_v26 }
 0x6e4   : > { %2201 = vmatmul.msk.f32.gmra.mxu0 %vm495_vm10, %v2726_v31 }
 0x702   : > { %v927_v27 = vpop.permute.xlu0 %926 }
 0x703   : > { %v929_v28 = vmul.f32 %v927_v27, %v910_v13 }
 0x705   : > { %931 = vrot.lane.b32.xlu2 %v929_v28, %s3458_s27 }
 0x74f   : > { %v1030_v10 = vpop.permute.xlu0 %1029 }
 0x750   : > { %2231 = vmatmul.msk.f32.vlgmr.msra.gmra.mxu3 %vm596_vm1, %v1030_v10  ;;  %2233 = vmatmul.msk.f32.vlgmr.msrb.gmra.mxu1 %vm596_vm1, %v1030_v10 }
 0x751   : > { %1447 = vmatpush.msrb.mxu1 %v2906_v11  ;;  %1375 = vmatpush.msra.mxu3 %v2997_v61 }
 0x753   : > { %1448 = vmatpush.msrb.mxu1 %v2911_v12  ;;  %1376 = vmatpush.msra.mxu3 %v3009_v63  ;;  %v2392_v63 = vld [vmem:[%s3444_s5] ss:$0 sm:$0xff] }
 0x755   : > { %1449 = vmatpush.msrb.mxu1 %v2951_v24  ;;  %1377 = vmatpush.msra.mxu3 %v3019_v1 }
 0x757   : > { %1450 = vmatpush.msrb.mxu1 %v2957_v25  ;;  %1378 = vmatpush.msra.mxu3 %v3031_v3 }
 0x75f   : > { %v932_v30 = vpop.permute.xlu2 %931 }
 0x760   : > { %934 = vst.msk [vmem:[#allocation3 + $0x8] sm:$0xff] %vm596_vm1, %v932_v30  ;;  %2230 = vmatmul.msk.f32.vlgmr.msra.gmra.mxu2 %vm596_vm1, %v932_v30 }
 0x761   : > { %1350 = vmatpush.msra.mxu2 %v2992_v60  ;;  %v562_v11 = vpop.f32.mrf.mxu0 }
 0x762   : > { %v563_v12 = vadd.f32 %v2977_v32, %v562_v11 }
 0x763   : > { %1351 = vmatpush.msra.mxu2 %v3002_v62 }
 0x765   : > { %1352 = vmatpush.msra.mxu2 %v3014_v0 }
 0x767   : > { %1353 = vmatpush.msra.mxu2 %v3026_v2 }
 0x7cd   : > { %v1122_v24 = vpop.f32.mrf.mxu1 }
 0x7ce   : > { %v1125_v25 = vadd.f32 %v1122_v24, %v563_v12  ;;  %v2393_v12 = vld [vmem:[%s3444_s5] ss:$0 sm:$0xff] }
 0x7d0   : > { %2439 = vtanh.f32 %v1125_v25  ;;  %v2234_v33 = vmul.f32 -1.442695, %v1125_v25 }
 0x7d3   : > { %v1050_v60 = vpop.f32.mrf.mxu3 }
 0x7d6   : > { %v2440_v61 = vpop.eup %2439 }
 0x7d7   : > { %1148 = vrot.lane.b32.xlu0 %v2440_v61, %s3456_s16 }
 0x7e3   : > { %v1025_v1 = vpop.f32.mrf.mxu2 }
 0x7e4   : > { %v1051_v62 = vadd.f32 %v1050_v60, %v1025_v1 }
 0x7e6   : > { %v1057_v3 = vadd.f32 %v2392_v63, %v1051_v62 }
 0x7e8   : > { %2441 = vtanh.f32 %v1057_v3  ;;  %v2232_v34 = vmul.f32 -1.442695, %v1057_v3 }
 0x7e9   : > { %2443 = vpow2.f32 %v2234_v33 }
 0x7ea   : > { %2445 = vpow2.f32 %v2232_v34 }
 0x7ee   : > { %v2442_v0 = vpop.eup %2441 }
 0x7ef   : > { %1080 = vrot.lane.b32.xlu2 %v2442_v0, %s3456_s16  ;;  %v2444_v35 = vpop.eup %2443 }
 0x7f0   : > { %v2446_v36 = vpop.eup %2445  ;;  %v1129_v37 = vadd.f32 1.0, %v2444_v35 }
 0x7f1   : > { %v1061_v38 = vadd.f32 1.0, %v2446_v36 }
 0x7f2   : > { %2447 = vrcp.f32 %v1129_v37  ;;  %vm1135_vm13 = vweird.f32 %v1129_v37  ;;  %v1141_v49 = vand.u32 2147483648, %v1129_v37  ;;  %v1139_v51 = vand.u32 2147483647, %v1129_v37 }
 0x7f3   : > { %2449 = vrcp.f32 %v1061_v38  ;;  %v1073_v50 = vand.u32 2147483648, %v1061_v38  ;;  %vm1067_vm15 = vweird.f32 %v1061_v38  ;;  %v1071_v52 = vand.u32 2147483647, %v1061_v38 }
 0x7f4   : > { %v1142_v55 = vor.u32 1.1754944e-38, %v1141_v49  ;;  %vm1140_vm2 = vcmp.eq.f32.partialorder %v1139_v51, 8.507059e+37 }
 0x7f5   : > { %v1074_v56 = vor.u32 1.1754944e-38, %v1073_v50  ;;  %vm1072_vm3 = vcmp.eq.f32.partialorder %v1071_v52, 8.507059e+37 }
 0x7f8   : > { %v2448_v39 = vpop.eup %2447 }
 0x7f9   : > { %v2450_v40 = vpop.eup %2449  ;;  %v1131_v41 = vmul.f32 %v2448_v39, %v1129_v37  ;;  %vm1136_vm11 = vweird.f32 %v2448_v39 }
 0x7fa   : > { %v1063_v42 = vmul.f32 %v2450_v40, %v1061_v38  ;;  %vm1068_vm12 = vweird.f32 %v2450_v40  ;;  %vm1137_vm14 = vmor %vm1135_vm13, %vm1136_vm11 }
 0x7fb   : > { %v1132_v43 = vsub.f32 1.0, %v1131_v41  ;;  %vm1069_vm0 = vmor %vm1067_vm15, %vm1068_vm12 }
 0x7fc   : > { %v1064_v44 = vsub.f32 1.0, %v1063_v42 }
 0x7fd   : > { %v1133_v45 = vmul.f32 %v2448_v39, %v1132_v43 }
 0x7fe   : > { %v1065_v46 = vmul.f32 %v2450_v40, %v1064_v44 }
 0x7ff   : > { %v1134_v47 = vadd.f32 %v2448_v39, %v1133_v45 }
 0x800   : > { %v1066_v48 = vadd.f32 %v2450_v40, %v1065_v46 }
 0x801   : > { %v1138_v53 = vsel %vm1137_vm14, %v2448_v39, %v1134_v47 }
 0x802   : > { %v1070_v54 = vsel %vm1069_vm0, %v2450_v40, %v1066_v48  ;;  %v1143_v59 = vsel %vm1140_vm2, %v1142_v55, %v1138_v53 }
 0x803   : > { %v1075_v6 = vsel %vm1072_vm3, %v1074_v56, %v1070_v54  ;;  %v1146_v9 = vmul.f32 %v1143_v59, %v3109_v16 }
 0x804   : > { %v1078_v17 = vmul.f32 %v1075_v6, %v3115_v21 }
 0x849   : > { %v1149_v57 = vpop.permute.xlu0 %1148  ;;  %v1081_v5 = vpop.permute.xlu2 %1080 }
 0x84a   : > { %v1151_v7 = vmul.f32 %v1149_v57, %v1143_v59  ;;  %v1083_v8 = vmul.f32 %v1081_v5, %v1075_v6 }
 0x84c   : > { %1153 = vrot.lane.b32.xlu2 %v1151_v7, %s3458_s27  ;;  %1085 = vrot.lane.b32.xlu1 %v1083_v8, %s3458_s27 }
 0x8a6   : > { %v1154_v13 = vpop.permute.xlu2 %1153 }
 0x8a7   : > { %v3148_v58 = vadd.f32 %v1154_v13, %v1146_v9 }
 0x8a9   : > { %2451 = vtanh.f32 %v3148_v58 }
 0x8af   : > { %v2452_v14 = vpop.eup %2451 }
 0x8b0   : > { %1159 = vrot.lane.b32.xlu1 %v2452_v14, %s3456_s16 }
 0x8b8   : > { %481 = vperm.xlu1 %2388, %v462_v15  }
 0x8be   : > { %v1086_v18 = vpop.permute.xlu1 %1085 }
 0x8bf   : > { %v3154_v19 = vadd.f32 %v1086_v18, %v1078_v17  ;;  %v463_v17 = vld [vmem:[%s2881_s19 + $0x28] sm:$0xff] }
 0x8c1   : > { %2453 = vtanh.f32 %v3154_v19 }
 0x8c7   : > { %v2454_v20 = vpop.eup %2453 }
 0x8c8   : > { %1091 = vrot.lane.b32.xlu0 %v2454_v20, %s3456_s16 }
 0x922   : > { %v1160_v16 = vpop.permute.xlu1 %1159 }
 0x923   : > { %v1162_v22 = vmul.f32 %v1160_v16, %v1143_v59 }
 0x925   : > { %1194 = vrot.lane.b32.xlu0 %v1162_v22, %s3458_s27 }
 0x92a   : > { %v482_v4 = vpop.permute.xlu1 %481 }
 0x92b   : > { %vm496_vm4 = vcmp.eq.s32.totalorder %v2970_v29, %v482_v4 }
 0x92c   : > { %2202 = vmatmul.msk.f32.gmra.mxu0 %vm496_vm4, %v2726_v31 }
 0x93a   : > { %v1092_v23 = vpop.permute.xlu0 %1091 }
 0x93b   : > { %v1094_v26 = vmul.f32 %v1092_v23, %v1075_v6 }
 0x93d   : > { %1096 = vrot.lane.b32.xlu2 %v1094_v26, %s3458_s27 }
 0x997   : > { %v1097_v21 = vpop.permute.xlu2 %1096  ;;  %v1195_v27 = vpop.permute.xlu0 %1194 }
 0x998   : > { %1099 = vst.msk [vmem:[#allocation3 + $0x10] sm:$0xff] %vm596_vm1, %v1097_v21  ;;  %2239 = vmatmul.msk.f32.vlgmr.msrb.gmra.mxu2 %vm596_vm1, %v1097_v21  ;;  %2240 = vmatmul.msk.f32.vlgmr.msrb.gmra.mxu3 %vm596_vm1, %v1195_v27 }
 0x999   : > { %2242 = vmatmul.msk.f32.vlgmr.msra.gmra.mxu1 %vm596_vm1, %v1195_v27 }
 0x9a9   : > { %v565_v28 = vpop.f32.mrf.mxu0 }
 0x9aa   : > { %v566_v10 = vadd.f32 %v2977_v32, %v565_v28 }
 0xa16   : > { %v1287_v30 = vpop.f32.mrf.mxu1 }
 0xa17   : > { %v1290_v11 = vadd.f32 %v1287_v30, %v566_v10  ;;  %v2394_v10 = vld [vmem:[%s3444_s5] ss:$0 sm:$0xff] }
 0xa19   : > { %2455 = vtanh.f32 %v1290_v11  ;;  %v2243_v33 = vmul.f32 -1.442695, %v1290_v11 }
 0xa1b   : > { %v1190_v24 = vpop.f32.mrf.mxu2  ;;  %v1215_v25 = vpop.f32.mrf.mxu3 }
 0xa1c   : > { %v1216_v61 = vadd.f32 %v1215_v25, %v1190_v24 }
 0xa1e   : > { %v1222_v63 = vadd.f32 %v2393_v12, %v1216_v61 }
 0xa1f   : > { %v2456_v60 = vpop.eup %2455 }
 0xa20   : > { %2457 = vtanh.f32 %v1222_v63  ;;  %1313 = vrot.lane.b32.xlu0 %v2456_v60, %s3456_s16  ;;  %v2241_v62 = vmul.f32 -1.442695, %v1222_v63 }
 0xa22   : > { %2459 = vpow2.f32 %v2241_v62 }
 0xa26   : > { %v2458_v1 = vpop.eup %2457 }
 0xa27   : > { %1245 = vrot.lane.b32.xlu2 %v2458_v1, %s3456_s16 }
 0xa28   : > { %v2460_v3 = vpop.eup %2459 }
 0xa29   : > { %v1226_v0 = vadd.f32 1.0, %v2460_v3 }
 0xa2b   : > { %2461 = vrcp.f32 %v1226_v0  ;;  %v1238_v41 = vand.u32 2147483648, %v1226_v0  ;;  %vm1232_vm6 = vweird.f32 %v1226_v0  ;;  %v1236_v43 = vand.u32 2147483647, %v1226_v0 }
 0xa2c   : > { %2463 = vpow2.f32 %v2243_v33 }
 0xa2d   : > { %v1239_v45 = vor.u32 1.1754944e-38, %v1238_v41  ;;  %vm1237_vm8 = vcmp.eq.f32.partialorder %v1236_v43, 8.507059e+37 }
 0xa31   : > { %v2462_v34 = vpop.eup %2461 }
 0xa32   : > { %v1228_v35 = vmul.f32 %v2462_v34, %v1226_v0  ;;  %v2464_v36 = vpop.eup %2463  ;;  %vm1233_vm5 = vweird.f32 %v2462_v34 }
 0xa33   : > { %v1294_v37 = vadd.f32 1.0, %v2464_v36  ;;  %vm1234_vm7 = vmor %vm1232_vm6, %vm1233_vm5 }
 0xa34   : > { %v1229_v38 = vsub.f32 1.0, %v1228_v35 }
 0xa35   : > { %2465 = vrcp.f32 %v1294_v37  ;;  %v1306_v53 = vand.u32 2147483648, %v1294_v37  ;;  %vm1300_vm10 = vweird.f32 %v1294_v37  ;;  %v1304_v54 = vand.u32 2147483647, %v1294_v37 }
 0xa36   : > { %v1230_v39 = vmul.f32 %v2462_v34, %v1229_v38 }
 0xa37   : > { %v1307_v56 = vor.u32 1.1754944e-38, %v1306_v53  ;;  %vm1305_vm12 = vcmp.eq.f32.partialorder %v1304_v54, 8.507059e+37 }
 0xa38   : > { %v1231_v40 = vadd.f32 %v2462_v34, %v1230_v39 }
 0xa3a   : > { %v1235_v44 = vsel %vm1234_vm7, %v2462_v34, %v1231_v40 }
 0xa3b   : > { %v2466_v42 = vpop.eup %2465  ;;  %v1240_v48 = vsel %vm1237_vm8, %v1239_v45, %v1235_v44 }
 0xa3c   : > { %v1296_v46 = vmul.f32 %v2466_v42, %v1294_v37  ;;  %vm1301_vm9 = vweird.f32 %v2466_v42  ;;  %v1243_v9 = vmul.f32 %v1240_v48, %v3154_v19 }
 0xa3d   : > { %vm1302_vm11 = vmor %vm1300_vm10, %vm1301_vm9 }
 0xa3e   : > { %v1297_v50 = vsub.f32 1.0, %v1296_v46 }
 0xa40   : > { %v1298_v51 = vmul.f32 %v2466_v42, %v1297_v50 }
 0xa42   : > { %v1299_v52 = vadd.f32 %v2466_v42, %v1298_v51 }
 0xa44   : > { %v1303_v55 = vsel %vm1302_vm11, %v2466_v42, %v1299_v52 }
 0xa45   : > { %v1308_v59 = vsel %vm1305_vm12, %v1307_v56, %v1303_v55 }
 0xa46   : > { %v1311_v6 = vmul.f32 %v1308_v59, %v3148_v58 }
 0xa81   : > { %v1246_v47 = vpop.permute.xlu2 %1245 }
 0xa82   : > { %v1248_v49 = vmul.f32 %v1246_v47, %v1240_v48 }
 0xa84   : > { %1250 = vrot.lane.b32.xlu1 %v1248_v49, %s3458_s27 }
 0xa92   : > { %v1314_v57 = vpop.permute.xlu0 %1313 }
 0xa93   : > { %v1316_v5 = vmul.f32 %v1314_v57, %v1308_v59 }
 0xa95   : > { %1318 = vrot.lane.b32.xlu2 %v1316_v5, %s3458_s27 }
 0xaef   : > { %v1319_v7 = vpop.permute.xlu2 %1318 }
 0xaf0   : > { %v3175_v8 = vadd.f32 %v1319_v7, %v1311_v6 }
 0xaf2   : > { %2467 = vtanh.f32 %v3175_v8 }
 0xaf6   : > { %v1251_v13 = vpop.permute.xlu1 %1250 }
 0xaf7   : > { %v3179_v14 = vadd.f32 %v1251_v13, %v1243_v9  ;;  %v464_v13 = vld [vmem:[%s2881_s19 + $0x30] sm:$0xff] }
 0xaf8   : > { %v2468_v15 = vpop.eup %2467 }
 0xaf9   : > { %2469 = vtanh.f32 %v3179_v14  ;;  %1324 = vrot.lane.b32.xlu1 %v2468_v15, %s3456_s16 }
 0xaff   : > { %v2470_v18 = vpop.eup %2469 }
 0xb00   : > { %1256 = vrot.lane.b32.xlu0 %v2470_v18, %s3456_s16 }
 0xb01   : > { %484 = vperm.xlu1 %2388, %v463_v17   ;;  %v3226_v17 = vld [vmem:[%s3442_s3 + $0x28] sm:$0xff] }
 0xb6b   : > { %v1325_v58 = vpop.permute.xlu1 %1324 }
 0xb6c   : > { %v1327_v20 = vmul.f32 %v1325_v58, %v1308_v59 }
 0xb6e   : > { %1359 = vrot.lane.b32.xlu0 %v1327_v20, %s3458_s27 }
 0xb72   : > { %v1257_v16 = vpop.permute.xlu0 %1256 }
 0xb73   : > { %v485_v22 = vpop.permute.xlu1 %484  ;;  %v1259_v19 = vmul.f32 %v1257_v16, %v1240_v48 }
 0xb74   : > { %vm497_vm13 = vcmp.eq.s32.totalorder %v2970_v29, %v485_v22 }
 0xb75   : > { %2203 = vmatmul.msk.f32.gmra.mxu0 %vm497_vm13, %v2726_v31  ;;  %1261 = vrot.lane.b32.xlu2 %v1259_v19, %s3458_s27  ;;  %v1496_v19 = vld [vmem:[%s3443_s4 + $0x18] sm:$0xff] }
 0xb76   : > { %1540 = vmatpush.msrb.mxu3 %v1496_v19 }
 0xbcf   : > { %v1262_v4 = vpop.permute.xlu2 %1261 }
 0xbd0   : > { %1264 = vst.msk [vmem:[#allocation3 + $0x18] sm:$0xff] %vm596_vm1, %v1262_v4  ;;  %2248 = vmatmul.msk.f32.vlgmr.msra.gmra.mxu2 %vm596_vm1, %v1262_v4  ;;  %v1598_v4 = vld [vmem:[%s3442_s3 + $0x10] sm:$0xff] }
 0xbe0   : > { %v1360_v23 = vpop.permute.xlu0 %1359 }
 0xbe1   : > { %2249 = vmatmul.msk.f32.vlgmr.msra.gmra.mxu3 %vm596_vm1, %v1360_v23  ;;  %2251 = vmatmul.msk.f32.vlgmr.msrb.gmra.mxu1 %vm596_vm1, %v1360_v23  ;;  %v1495_v23 = vld [vmem:[%s3443_s4 + $0x10] sm:$0xff] }
 0xbe2   : > { %1541 = vmatpush.msrb.mxu3 %v1495_v23 }
 0xbf2   : > { %v568_v26 = vpop.f32.mrf.mxu0 }
 0xbf3   : > { %v569_v21 = vadd.f32 %v2977_v32, %v568_v26  ;;  %v1597_v26 = vld [vmem:[%s3442_s3 + $0x8] sm:$0xff] }
 0xc53   : > { %v1355_v30 = vpop.f32.mrf.mxu2 }
 0xc5e   : > { %v1452_v27 = vpop.f32.mrf.mxu1 }
 0xc5f   : > { %v1455_v28 = vadd.f32 %v1452_v27, %v569_v21  ;;  %v1494_v21 = vld [vmem:[%s3443_s4 + $0x8] sm:$0xff]  ;;  %v1596_v27 = vld [vmem:[%s3442_s3] sm:$0xff] }
 0xc60   : > { %1542 = vmatpush.msrb.mxu3 %v1494_v21 }
 0xc61   : > { %2471 = vtanh.f32 %v1455_v28  ;;  %v2252_v1 = vmul.f32 -1.442695, %v1455_v28  ;;  %v1493_v28 = vld [vmem:[%s3443_s4] sm:$0xff] }
 0xc62   : > { %1543 = vmatpush.msrb.mxu3 %v1493_v28 }
 0xc64   : > { %v1380_v11 = vpop.f32.mrf.mxu3  ;;  %1705 = vmatpush.msra.mxu3 %v1496_v19 }
 0xc65   : > { %v1381_v12 = vadd.f32 %v1380_v11, %v1355_v30 }
 0xc66   : > { %1706 = vmatpush.msra.mxu3 %v1495_v23 }
 0xc67   : > { %v2472_v24 = vpop.eup %2471  ;;  %v1387_v25 = vadd.f32 %v2394_v10, %v1381_v12  ;;  %v3269_v12 = vld [vmem:[%s3471_s2] ss:$0 sm:$0xff] }
 0xc68   : > { %1478 = vrot.lane.b32.xlu0 %v2472_v24, %s3456_s16  ;;  %1707 = vmatpush.msra.mxu3 %v1494_v21 }
 0xc69   : > { %2473 = vtanh.f32 %v1387_v25  ;;  %v2250_v63 = vmul.f32 -1.442695, %v1387_v25 }
 0xc6a   : > { %1708 = vmatpush.msra.mxu3 %v1493_v28 }
 0xc6b   : > { %2475 = vpow2.f32 %v2250_v63  ;;  %v2395_v63 = vld [vmem:[%s3444_s5] ss:$0 sm:$0xff] }
 0xc6f   : > { %v2474_v61 = vpop.eup %2473 }
 0xc70   : > { %1410 = vrot.lane.b32.xlu2 %v2474_v61, %s3456_s16 }
 0xc71   : > { %v2476_v32 = vpop.eup %2475 }
 0xc72   : > { %v1391_v60 = vadd.f32 1.0, %v2476_v32 }
 0xc74   : > { %2477 = vrcp.f32 %v1391_v60  ;;  %v1403_v38 = vand.u32 2147483648, %v1391_v60  ;;  %vm1397_vm15 = vweird.f32 %v1391_v60  ;;  %v1401_v39 = vand.u32 2147483647, %v1391_v60 }
 0xc75   : > { %2479 = vpow2.f32 %v2252_v1 }
 0xc76   : > { %v1404_v42 = vor.u32 1.1754944e-38, %v1403_v38  ;;  %vm1402_vm2 = vcmp.eq.f32.partialorder %v1401_v39, 8.507059e+37 }
 0xc7a   : > { %v2478_v62 = vpop.eup %2477 }
 0xc7b   : > { %v2480_v3 = vpop.eup %2479  ;;  %v1393_v0 = vmul.f32 %v2478_v62, %v1391_v60  ;;  %vm1398_vm14 = vweird.f32 %v2478_v62 }
 0xc7c   : > { %v1459_v33 = vadd.f32 1.0, %v2480_v3  ;;  %vm1399_vm0 = vmor %vm1397_vm15, %vm1398_vm14 }
 0xc7d   : > { %v1394_v34 = vsub.f32 1.0, %v1393_v0 }
 0xc7e   : > { %2481 = vrcp.f32 %v1459_v33  ;;  %v1471_v49 = vand.u32 2147483648, %v1459_v33  ;;  %vm1465_vm4 = vweird.f32 %v1459_v33  ;;  %v1469_v50 = vand.u32 2147483647, %v1459_v33 }
 0xc7f   : > { %v1395_v35 = vmul.f32 %v2478_v62, %v1394_v34 }
 0xc80   : > { %v1472_v52 = vor.u32 1.1754944e-38, %v1471_v49  ;;  %vm1470_vm6 = vcmp.eq.f32.partialorder %v1469_v50, 8.507059e+37 }
 0xc81   : > { %v1396_v36 = vadd.f32 %v2478_v62, %v1395_v35 }
 0xc83   : > { %v1400_v40 = vsel %vm1399_vm0, %v2478_v62, %v1396_v36 }
 0xc84   : > { %v2482_v37 = vpop.eup %2481  ;;  %v1405_v44 = vsel %vm1402_vm2, %v1404_v42, %v1400_v40 }
 0xc85   : > { %v1461_v41 = vmul.f32 %v2482_v37, %v1459_v33  ;;  %vm1466_vm3 = vweird.f32 %v2482_v37  ;;  %v1408_v5 = vmul.f32 %v1405_v44, %v3179_v14  ;;  %v3220_v14 = vld [vmem:[%s3442_s3 + $0x30] sm:$0xff] }
 0xc86   : > { %vm1467_vm5 = vmor %vm1465_vm4, %vm1466_vm3 }
 0xc87   : > { %v1462_v46 = vsub.f32 1.0, %v1461_v41 }
 0xc89   : > { %v1463_v47 = vmul.f32 %v2482_v37, %v1462_v46 }
 0xc8b   : > { %v1464_v48 = vadd.f32 %v2482_v37, %v1463_v47 }
 0xc8d   : > { %v1468_v51 = vsel %vm1467_vm5, %v2482_v37, %v1464_v48 }
 0xc8e   : > { %v1473_v54 = vsel %vm1470_vm6, %v1472_v52, %v1468_v51 }
 0xc8f   : > { %v1476_v56 = vmul.f32 %v1473_v54, %v3175_v8  ;;  %v3215_v8 = vld [vmem:[%s3442_s3 + $0x38] sm:$0xff] }
 0xc90   : > { %1515 = vmatpush.msrb.mxu2 %v3215_v8 }
 0xc92   : > { %1516 = vmatpush.msrb.mxu2 %v3220_v14 }
 0xc94   : > { %1517 = vmatpush.msrb.mxu2 %v3226_v17 }
 0xc96   : > { %1518 = vmatpush.msrb.mxu2 %v3026_v2  ;;  %v1599_v2 = vld [vmem:[%s3442_s3 + $0x18] sm:$0xff] }
 0xc97   : > { %1612 = vmatpush.msra.mxu1 %v1599_v2 }
 0xc98   : > { %1680 = vmatpush.msra.mxu2 %v3215_v8 }
 0xc99   : > { %1613 = vmatpush.msra.mxu1 %v1598_v4 }
 0xc9a   : > { %1681 = vmatpush.msra.mxu2 %v3220_v14 }
 0xc9b   : > { %1614 = vmatpush.msra.mxu1 %v1597_v26 }
 0xc9c   : > { %1682 = vmatpush.msra.mxu2 %v3226_v17 }
 0xc9d   : > { %1615 = vmatpush.msra.mxu1 %v1596_v27 }
 0xc9f   : > { %1777 = vmatpush.msrb.mxu1 %v1599_v2 }
 0xca1   : > { %1778 = vmatpush.msrb.mxu1 %v1598_v4  ;;  %v465_v4 = vld [vmem:[%s2881_s19 + $0x38] sm:$0xff]  ;;  %s2730_s19 = smov 128  }
 0xca3   : > { %1779 = vmatpush.msrb.mxu1 %v1597_v26 }
 0xca5   : > { %1780 = vmatpush.msrb.mxu1 %v1596_v27 }
 0xcca   : > { %v1411_v43 = vpop.permute.xlu2 %1410 }
 0xccb   : > { %v1413_v45 = vmul.f32 %v1411_v43, %v1405_v44 }
 0xccd   : > { %1415 = vrot.lane.b32.xlu1 %v1413_v45, %s3458_s27 }
 0xcda   : > { %v1479_v53 = vpop.permute.xlu0 %1478 }
 0xcdb   : > { %v1481_v55 = vmul.f32 %v1479_v53, %v1473_v54 }
 0xcdd   : > { %1483 = vrot.lane.b32.xlu2 %v1481_v55, %s3458_s27 }
 0xd37   : > { %v1484_v57 = vpop.permute.xlu2 %1483 }
 0xd38   : > { %v3202_v59 = vadd.f32 %v1484_v57, %v1476_v56 }
 0xd3a   : > { %2483 = vtanh.f32 %v3202_v59 }
 0xd3f   : > { %v1416_v6 = vpop.permute.xlu1 %1415 }
 0xd40   : > { %v2484_v7 = vpop.eup %2483  ;;  %v3206_v9 = vadd.f32 %v1416_v6, %v1408_v5 }
 0xd41   : > { %1489 = vrot.lane.b32.xlu1 %v2484_v7, %s3456_s16 }
 0xd42   : > { %2485 = vtanh.f32 %v3206_v9 }
 0xd48   : > { %v2486_v15 = vpop.eup %2485 }
 0xd49   : > { %487 = vperm.xlu1 %2388, %v464_v13   ;;  %1421 = vrot.lane.b32.xlu0 %v2486_v15, %s3456_s16  ;;  %s2070_s16 = sshll.u32 %s3451_s12, 4  ;;  %s2071_s16 = int_to_ptr.hbm [resolvable:$true] %s2070_s16 }
 0xdb3   : > { %v1490_v18 = vpop.permute.xlu1 %1489 }
 0xdb4   : > { %v1492_v58 = vmul.f32 %v1490_v18, %v1473_v54 }
 0xdb6   : > { %1524 = vrot.lane.b32.xlu0 %v1492_v58, %s3458_s27 }
 0xdbb   : > { %v488_v20 = vpop.permute.xlu1 %487  ;;  %v1422_v16 = vpop.permute.xlu0 %1421 }
 0xdbc   : > { %vm498_vm7 = vcmp.eq.s32.totalorder %v2970_v29, %v488_v20  ;;  %v1424_v22 = vmul.f32 %v1422_v16, %v1405_v44 }
 0xdbd   : > { %2204 = vmatmul.msk.f32.gmra.mxu0 %vm498_vm7, %v2726_v31 }
 0xdbe   : > { %1426 = vrot.lane.b32.xlu2 %v1424_v22, %s3458_s27  ;;  %s2028_s27 = scalar_lea.sflag [#allocation6], %s3474_s26 }
 0xe18   : > { %v1427_v10 = vpop.permute.xlu2 %1426 }
 0xe19   : > { %1429 = vst.msk [vmem:[#allocation3 + $0x20] sm:$0xff] %vm596_vm1, %v1427_v10  ;;  %2257 = vmatmul.msk.f32.vlgmr.msrb.gmra.mxu2 %vm596_vm1, %v1427_v10 }
 0xe28   : > { %v1525_v30 = vpop.permute.xlu0 %1524 }
 0xe29   : > { %2258 = vmatmul.msk.f32.vlgmr.msrb.gmra.mxu3 %vm596_vm1, %v1525_v30  ;;  %2260 = vmatmul.msk.f32.vlgmr.msra.gmra.mxu1 %vm596_vm1, %v1525_v30  ;;  %v1938_v30 = vld [vmem:[#allocation3] sm:$0xff] }
 0xe2a   : > { %1870 = vmatpush.msrb.mxu3 %v1496_v19 }
 0xe2c   : > { %1871 = vmatpush.msrb.mxu3 %v1495_v23 }
 0xe2e   : > { %1872 = vmatpush.msrb.mxu3 %v1494_v21 }
 0xe30   : > { %1873 = vmatpush.msrb.mxu3 %v1493_v28 }
 0xe3a   : > { %v571_v11 = vpop.f32.mrf.mxu0 }
 0xe3b   : > { %v572_v24 = vadd.f32 %v3269_v12, %v571_v11  ;;  %v1939_v11 = vld [vmem:[#allocation3 + $0x8] sm:$0xff] }
 0xe9c   : > { %v1520_v32 = vpop.f32.mrf.mxu2 }
 0xea6   : > { %v1617_v25 = vpop.f32.mrf.mxu1 }
 0xea7   : > { %v1620_v61 = vadd.f32 %v1617_v25, %v572_v24  ;;  %v1940_v24 = vld [vmem:[#allocation3 + $0x10] sm:$0xff] }
 0xea9   : > { %2487 = vtanh.f32 %v1620_v61  ;;  %v2261_v36 = vmul.f32 -1.442695, %v1620_v61 }
 0xeac   : > { %v1545_v60 = vpop.f32.mrf.mxu3 }
 0xead   : > { %v1546_v1 = vadd.f32 %v1545_v60, %v1520_v32  ;;  %v2396_v60 = vld [vmem:[%s3444_s5] ss:$0 sm:$0xff] }
 0xeaf   : > { %v2488_v62 = vpop.eup %2487  ;;  %v1552_v3 = vadd.f32 %v2395_v63, %v1546_v1  ;;  %v3326_v1 = vld [vmem:[%s3446_s7] ss:$0 sm:$0xff] }
 0xeb0   : > { %1643 = vrot.lane.b32.xlu0 %v2488_v62, %s3472_s23 }
 0xeb1   : > { %2489 = vtanh.f32 %v1552_v3  ;;  %v2259_v33 = vmul.f32 -1.442695, %v1552_v3 }
 0xeb3   : > { %2491 = vpow2.f32 %v2259_v33 }
 0xeb7   : > { %v2490_v0 = vpop.eup %2489 }
 0xeb8   : > { %1575 = vrot.lane.b32.xlu2 %v2490_v0, %s3472_s23 }
 0xeb9   : > { %v2492_v34 = vpop.eup %2491 }
 0xeba   : > { %v1556_v35 = vadd.f32 1.0, %v2492_v34 }
 0xebc   : > { %2493 = vrcp.f32 %v1556_v35  ;;  %v1568_v45 = vand.u32 2147483648, %v1556_v35  ;;  %vm1562_vm9 = vweird.f32 %v1556_v35  ;;  %v1566_v46 = vand.u32 2147483647, %v1556_v35 }
 0xebd   : > { %2495 = vpow2.f32 %v2261_v36 }
 0xebe   : > { %v1569_v49 = vor.u32 1.1754944e-38, %v1568_v45  ;;  %vm1567_vm11 = vcmp.eq.f32.partialorder %v1566_v46, 8.507059e+37 }
 0xec2   : > { %v2494_v37 = vpop.eup %2493 }
 0xec3   : > { %v2496_v38 = vpop.eup %2495  ;;  %v1558_v39 = vmul.f32 %v2494_v37, %v1556_v35  ;;  %vm1563_vm8 = vweird.f32 %v2494_v37 }
 0xec4   : > { %v1624_v40 = vadd.f32 1.0, %v2496_v38  ;;  %vm1564_vm10 = vmor %vm1562_vm9, %vm1563_vm8 }
 0xec5   : > { %v1559_v41 = vsub.f32 1.0, %v1558_v39 }
 0xec6   : > { %2497 = vrcp.f32 %v1624_v40  ;;  %v1636_v56 = vand.u32 2147483648, %v1624_v40  ;;  %vm1630_vm13 = vweird.f32 %v1624_v40  ;;  %v1634_v57 = vand.u32 2147483647, %v1624_v40 }
 0xec7   : > { %v1560_v42 = vmul.f32 %v2494_v37, %v1559_v41 }
 0xec8   : > { %v1637_v6 = vor.u32 1.1754944e-38, %v1636_v56  ;;  %vm1635_vm15 = vcmp.eq.f32.partialorder %v1634_v57, 8.507059e+37 }
 0xec9   : > { %v1561_v43 = vadd.f32 %v2494_v37, %v1560_v42 }
 0xecb   : > { %v1565_v47 = vsel %vm1564_vm10, %v2494_v37, %v1561_v43 }
 0xecc   : > { %v2498_v44 = vpop.eup %2497  ;;  %v1570_v51 = vsel %vm1567_vm11, %v1569_v49, %v1565_v47 }
 0xecd   : > { %v1626_v48 = vmul.f32 %v2498_v44, %v1624_v40  ;;  %vm1631_vm12 = vweird.f32 %v2498_v44  ;;  %v1573_v16 = vmul.f32 %v1570_v51, %v3206_v9 }
 0xece   : > { %vm1632_vm14 = vmor %vm1630_vm13, %vm1631_vm12 }
 0xecf   : > { %v1627_v53 = vsub.f32 1.0, %v1626_v48 }
 0xed1   : > { %v1628_v54 = vmul.f32 %v2498_v44, %v1627_v53 }
 0xed3   : > { %v1629_v55 = vadd.f32 %v2498_v44, %v1628_v54 }
 0xed5   : > { %v1633_v5 = vsel %vm1632_vm14, %v2498_v44, %v1629_v55 }
 0xed6   : > { %v1638_v13 = vsel %vm1635_vm15, %v1637_v6, %v1633_v5 }
 0xed7   : > { %v1641_v18 = vmul.f32 %v1638_v13, %v3202_v59  ;;  %v2262_v59 = vld [vmem:[%s3442_s3 + $0x20] sm:$0xff] }
 0xed8   : > { %1683 = vmatpush.msra.mxu2 %v2262_v59 }
 0xeda   : > { %1845 = vmatpush.msrb.mxu2 %v3215_v8  ;;  %v1949_v8 = vld [vmem:[%s3445_s6 + $0x18] sm:$0xff] }
 0xedb   : > { %1990 = vmatpush.msra.mxu1 %v1949_v8 }
 0xedc   : > { %1846 = vmatpush.msrb.mxu2 %v3220_v14  ;;  %v1948_v14 = vld [vmem:[%s3445_s6 + $0x10] sm:$0xff] }
 0xedd   : > { %1991 = vmatpush.msra.mxu1 %v1948_v14 }
 0xede   : > { %1847 = vmatpush.msrb.mxu2 %v3226_v17  ;;  %v1947_v17 = vld [vmem:[%s3445_s6 + $0x8] sm:$0xff] }
 0xedf   : > { %1992 = vmatpush.msra.mxu1 %v1947_v17 }
 0xee0   : > { %1848 = vmatpush.msrb.mxu2 %v2262_v59 }
 0xf12   : > { %v1576_v50 = vpop.permute.xlu2 %1575 }
 0xf13   : > { %v1578_v52 = vmul.f32 %v1576_v50, %v1570_v51 }
 0xf15   : > { %1580 = vrot.lane.b32.xlu1 %v1578_v52, %s3473_s30 }
 0xf22   : > { %v1644_v7 = vpop.permute.xlu0 %1643 }
 0xf23   : > { %v1646_v15 = vmul.f32 %v1644_v7, %v1638_v13 }
 0xf25   : > { %1648 = vrot.lane.b32.xlu2 %v1646_v15, %s3473_s30 }
 0xf7f   : > { %v1649_v58 = vpop.permute.xlu2 %1648 }
 0xf80   : > { %v3280_v20 = vadd.f32 %v1649_v58, %v1641_v18 }
 0xf82   : > { %2499 = vtanh.f32 %v3280_v20 }
 0xf87   : > { %v1581_v22 = vpop.permute.xlu1 %1580 }
 0xf88   : > { %v2500_v2 = vpop.eup %2499  ;;  %v3284_v19 = vadd.f32 %v1581_v22, %v1573_v16 }
 0xf89   : > { %1654 = vrot.lane.b32.xlu1 %v2500_v2, %s3472_s23 }
 0xf8a   : > { %2501 = vtanh.f32 %v3284_v19 }
 0xf90   : > { %v2502_v23 = vpop.eup %2501 }
 0xf91   : > { %490 = vperm.xlu1 %2388, %v465_v4   ;;  %1586 = vrot.lane.b32.xlu0 %v2502_v23, %s3472_s23 }
 0xffb   : > { %v1655_v9 = vpop.permute.xlu1 %1654 }
 0xffc   : > { %v1657_v26 = vmul.f32 %v1655_v9, %v1638_v13 }
 0xffe   : > { %1689 = vrot.lane.b32.xlu0 %v1657_v26, %s3473_s30 }
0x1003   : > { %v491_v21 = vpop.permute.xlu1 %490  ;;  %v1587_v27 = vpop.permute.xlu0 %1586 }
0x1004   : > { %vm499_vm0 = vcmp.eq.s32.totalorder %v2970_v29, %v491_v21  ;;  %v1589_v28 = vmul.f32 %v1587_v27, %v1570_v51  ;;  %v1946_v29 = vld [vmem:[%s3445_s6] sm:$0xff] }
0x1005   : > { %2205 = vmatmul.msk.f32.gmra.mxu0 %vm499_vm0, %v2726_v31  ;;  %1993 = vmatpush.msra.mxu1 %v1946_v29 }
0x1006   : > { %1591 = vrot.lane.b32.xlu2 %v1589_v28, %s3473_s30 }
0x1060   : > { %v1592_v31 = vpop.permute.xlu2 %1591 }
0x1061   : > { %1594 = vst.msk [vmem:[#allocation3 + $0x28] sm:$0xff] %vm596_vm1, %v1592_v31  ;;  %2266 = vmatmul.msk.f32.vlgmr.msra.gmra.mxu2 %vm596_vm1, %v1592_v31 }
0x1062   : > { %2296 = vmatpush.msra.mxu2 %v1949_v8 }
0x1064   : > { %2298 = vmatpush.msra.mxu2 %v1948_v14 }
0x1066   : > { %2300 = vmatpush.msra.mxu2 %v1947_v17 }
0x1068   : > { %2302 = vmatpush.msra.mxu2 %v1946_v29 }
0x1070   : > { %v1690_v10 = vpop.permute.xlu0 %1689 }
0x1071   : > { %2267 = vmatmul.msk.f32.vlgmr.msra.gmra.mxu3 %vm596_vm1, %v1690_v10  ;;  %2269 = vmatmul.msk.f32.vlgmr.msrb.gmra.mxu1 %vm596_vm1, %v1690_v10 }
0x1072   : > { %2297 = vmatpush.msra.mxu3 %v1949_v8 }
0x1074   : > { %2299 = vmatpush.msra.mxu3 %v1948_v14 }
0x1076   : > { %2301 = vmatpush.msra.mxu3 %v1947_v17 }
0x1078   : > { %2303 = vmatpush.msra.mxu3 %v1946_v29 }
0x1079   : > { %2278 = vmatmul.msk.f32.vlgmr.msra.gmra.mxu1 %vm596_vm1, %v1938_v30  ;;  %v1941_v30 = vld [vmem:[#allocation3 + $0x18] sm:$0xff] }
0x1081   : > { %2279 = vmatmul.msk.f32.gmra.mxu1 %vm596_vm1, %v1939_v11 }
0x1082   : > { %v574_v25 = vpop.f32.mrf.mxu0 }
0x1083   : > { %v575_v61 = vadd.f32 %v3269_v12, %v574_v25  ;;  %v1943_v25 = vld [vmem:[#allocation3 + $0x28] sm:$0xff] }
0x1089   : > { %2280 = vmatmul.msk.f32.gmra.mxu1 %vm596_vm1, %v1940_v24  ;;  %v1942_v24 = vld [vmem:[#allocation3 + $0x20] sm:$0xff] }
0x10e4   : > { %v1685_v62 = vpop.f32.mrf.mxu2 }
0x10ee   : > { %v1782_v63 = vpop.f32.mrf.mxu1 }
0x10ef   : > { %v1785_v32 = vadd.f32 %v1782_v63, %v575_v61 }
0x10f1   : > { %2503 = vtanh.f32 %v1785_v32  ;;  %v2270_v44 = vmul.f32 -1.442695, %v1785_v32 }
0x10f4   : > { %v1710_v3 = vpop.f32.mrf.mxu3 }
0x10f5   : > { %v1711_v0 = vadd.f32 %v1710_v3, %v1685_v62  ;;  %v2398_v62 = vld [vmem:[%s3444_s5] ss:$0 sm:$0xff] }
0x10f6   : > { %v1995_v33 = vpop.f32.mrf.mxu1 }
0x10f7   : > { %v2504_v34 = vpop.eup %2503  ;;  %v1717_v12 = vadd.f32 %v2396_v60, %v1711_v0  ;;  %v1996_v35 = vadd.f32 %v3326_v1, %v1995_v33 }
0x10f8   : > { %1808 = vrot.lane.b32.xlu0 %v2504_v34, %s3472_s23 }
0x10f9   : > { %2505 = vtanh.f32 %v1717_v12  ;;  %2019 = vst [vmem:[%s2883_s20] sm:$0xff] %v1996_v35  ;;  %v2268_v41 = vmul.f32 -1.442695, %v1717_v12 }
0x10fb   : > { %2507 = vpow2.f32 %v2268_v41 }
0x10fe   : > { %v1998_v36 = vpop.f32.mrf.mxu1 }
0x10ff   : > { %v2506_v37 = vpop.eup %2505  ;;  %v1999_v38 = vadd.f32 %v3326_v1, %v1998_v36 }
0x1100   : > { %1740 = vrot.lane.b32.xlu2 %v2506_v37, %s3472_s23 }
0x1101   : > { %2020 = vst [vmem:[%s2883_s20 + $0x8] sm:$0xff] %v1999_v38  ;;  %v2508_v42 = vpop.eup %2507 }
0x1102   : > { %v1721_v43 = vadd.f32 1.0, %v2508_v42 }
0x1104   : > { %2509 = vrcp.f32 %v1721_v43  ;;  %v1733_v53 = vand.u32 2147483648, %v1721_v43  ;;  %vm1727_vm3 = vweird.f32 %v1721_v43  ;;  %v1731_v54 = vand.u32 2147483647, %v1721_v43 }
0x1105   : > { %2511 = vpow2.f32 %v2270_v44 }
0x1106   : > { %v2001_v39 = vpop.f32.mrf.mxu1  ;;  %v1734_v57 = vor.u32 1.1754944e-38, %v1733_v53  ;;  %vm1732_vm5 = vcmp.eq.f32.partialorder %v1731_v54, 8.507059e+37 }
0x1107   : > { %v2002_v40 = vadd.f32 %v3326_v1, %v2001_v39 }
0x1109   : > { %2021 = vst [vmem:[%s2883_s20 + $0x10] sm:$0xff] %v2002_v40 }
0x110a   : > { %v2510_v45 = vpop.eup %2509 }
0x110b   : > { %v2512_v46 = vpop.eup %2511  ;;  %v1723_v47 = vmul.f32 %v2510_v45, %v1721_v43  ;;  %vm1728_vm2 = vweird.f32 %v2510_v45 }
0x110c   : > { %v1789_v48 = vadd.f32 1.0, %v2512_v46  ;;  %vm1729_vm4 = vmor %vm1727_vm3, %vm1728_vm2 }
0x110d   : > { %v1724_v49 = vsub.f32 1.0, %v1723_v47 }
0x110e   : > { %2513 = vrcp.f32 %v1789_v48  ;;  %v1801_v58 = vand.u32 2147483648, %v1789_v48  ;;  %vm1795_vm7 = vweird.f32 %v1789_v48  ;;  %v1799_v16 = vand.u32 2147483647, %v1789_v48 }
0x110f   : > { %v1725_v50 = vmul.f32 %v2510_v45, %v1724_v49 }
0x1110   : > { %v1802_v2 = vor.u32 1.1754944e-38, %v1801_v58  ;;  %vm1800_vm9 = vcmp.eq.f32.partialorder %v1799_v16, 8.507059e+37 }
0x1111   : > { %v1726_v51 = vadd.f32 %v2510_v45, %v1725_v50 }
0x1113   : > { %v1730_v55 = vsel %vm1729_vm4, %v2510_v45, %v1726_v51 }
0x1114   : > { %v2514_v52 = vpop.eup %2513  ;;  %v1735_v6 = vsel %vm1732_vm5, %v1734_v57, %v1730_v55 }
0x1115   : > { %v1791_v56 = vmul.f32 %v2514_v52, %v1789_v48  ;;  %vm1796_vm6 = vweird.f32 %v2514_v52  ;;  %v1738_v27 = vmul.f32 %v1735_v6, %v3284_v19 }
0x1116   : > { %vm1797_vm8 = vmor %vm1795_vm7, %vm1796_vm6 }
0x1117   : > { %v1792_v13 = vsub.f32 1.0, %v1791_v56 }
0x1119   : > { %v1793_v15 = vmul.f32 %v2514_v52, %v1792_v13 }
0x111b   : > { %v1794_v18 = vadd.f32 %v2514_v52, %v1793_v15 }
0x111d   : > { %v1798_v22 = vsel %vm1797_vm8, %v2514_v52, %v1794_v18 }
0x111e   : > { %v1803_v23 = vsel %vm1800_vm9, %v1802_v2, %v1798_v22 }
0x111f   : > { %v1806_v9 = vmul.f32 %v1803_v23, %v3280_v20 }
0x115a   : > { %v1741_v5 = vpop.permute.xlu2 %1740 }
0x115b   : > { %v1743_v7 = vmul.f32 %v1741_v5, %v1735_v6 }
0x115d   : > { %1745 = vrot.lane.b32.xlu1 %v1743_v7, %s3473_s30 }
0x116a   : > { %v1809_v4 = vpop.permute.xlu0 %1808 }
0x116b   : > { %v1811_v59 = vmul.f32 %v1809_v4, %v1803_v23 }
0x116d   : > { %1813 = vrot.lane.b32.xlu2 %v1811_v59, %s3473_s30 }
0x11c7   : > { %v1814_v26 = vpop.permute.xlu2 %1813 }
0x11c8   : > { %v3339_v21 = vadd.f32 %v1814_v26, %v1806_v9 }
0x11ca   : > { %2515 = vtanh.f32 %v3339_v21 }
0x11cf   : > { %v1746_v28 = vpop.permute.xlu1 %1745 }
0x11d0   : > { %v2516_v8 = vpop.eup %2515  ;;  %v3343_v14 = vadd.f32 %v1746_v28, %v1738_v27 }
0x11d1   : > { %1819 = vrot.lane.b32.xlu1 %v2516_v8, %s3472_s23 }
0x11d2   : > { %2517 = vtanh.f32 %v3343_v14 }
0x11d8   : > { %v2518_v17 = vpop.eup %2517 }
0x11d9   : > { %1751 = vrot.lane.b32.xlu0 %v2518_v17, %s3472_s23 }
0x1243   : > { %v1820_v29 = vpop.permute.xlu1 %1819 }
0x1244   : > { %v1822_v20 = vmul.f32 %v1820_v29, %v1803_v23 }
0x1246   : > { %1854 = vrot.lane.b32.xlu0 %v1822_v20, %s3473_s30 }
0x124b   : > { %v1752_v31 = vpop.permute.xlu0 %1751 }
0x124c   : > { %v1754_v10 = vmul.f32 %v1752_v31, %v1735_v6 }
0x124e   : > { %1756 = vrot.lane.b32.xlu2 %v1754_v10, %s3473_s30 }
0x12a8   : > { %v1757_v19 = vpop.permute.xlu2 %1756 }
0x12a9   : > { %1759 = vst.msk [vmem:[#allocation3 + $0x30] sm:$0xff] %vm596_vm1, %v1757_v19  ;;  %2275 = vmatmul.msk.f32.vlgmr.msrb.gmra.mxu2 %vm596_vm1, %v1757_v19 }
0x12b0   : > { %v1944_v61 = vld [vmem:[#allocation3 + $0x30] sm:$0xff] }
0x12b1   : > { %2281 = vmatmul.msk.f32.vlgmr.msra.gmra.mxu2 %vm596_vm1, %v1941_v30 }
0x12b8   : > { %v1855_v11 = vpop.permute.xlu0 %1854 }
0x12b9   : > { %1926 = vst.msk [vmem:[#allocation10] sm:$0xff] %vm596_vm1, %v1855_v11  ;;  %2276 = vmatmul.msk.f32.vlgmr.msrb.gmra.mxu3 %vm596_vm1, %v1855_v11  ;;  %2282 = vmatmul.msk.f32.gmra.mxu2 %vm596_vm1, %v1942_v24 }
0x12c1   : > { %2283 = vmatmul.msk.f32.gmra.mxu2 %vm596_vm1, %v1943_v25  ;;  %2284 = vmatmul.msk.f32.vlgmr.msra.gmra.mxu3 %vm596_vm1, %v1944_v61 }
0x132c   : > { %v1850_v63 = vpop.f32.mrf.mxu2 }
0x1334   : > { %v2004_v32 = vpop.f32.mrf.mxu2 }
0x1335   : > { %v2005_v60 = vadd.f32 %v3326_v1, %v2004_v32 }
0x1337   : > { %2022 = vst [vmem:[%s2883_s20 + $0x18] sm:$0xff] %v2005_v60 }
0x133c   : > { %v1875_v3 = vpop.f32.mrf.mxu3  ;;  %v2007_v0 = vpop.f32.mrf.mxu2 }
0x133d   : > { %v1876_v33 = vadd.f32 %v1875_v3, %v1850_v63  ;;  %v2008_v34 = vadd.f32 %v3326_v1, %v2007_v0 }
0x133f   : > { %v1882_v12 = vadd.f32 %v2398_v62, %v1876_v33  ;;  %2023 = vst [vmem:[%s2883_s20 + $0x20] sm:$0xff] %v2008_v34 }
0x1341   : > { %2519 = vtanh.f32 %v1882_v12  ;;  %v2277_v40 = vmul.f32 -1.442695, %v1882_v12 }
0x1343   : > { %2521 = vpow2.f32 %v2277_v40 }
0x1344   : > { %v2010_v35 = vpop.f32.mrf.mxu2  ;;  %v2013_v36 = vpop.f32.mrf.mxu3 }
0x1345   : > { %v2011_v37 = vadd.f32 %v3326_v1, %v2010_v35  ;;  %v2014_v38 = vadd.f32 %v3326_v1, %v2013_v36 }
0x1347   : > { %v2520_v39 = vpop.eup %2519  ;;  %2024 = vst [vmem:[%s2883_s20 + $0x28] sm:$0xff] %v2011_v37 }
0x1348   : > { %2025 = vst [vmem:[%s2883_s20 + $0x30] sm:$0xff] %v2014_v38  ;;  %1905 = vrot.lane.b32.xlu1 %v2520_v39, %s3472_s23 }
0x1349   : > { %v2522_v41 = vpop.eup %2521 }
0x134a   : > { %v1886_v42 = vadd.f32 1.0, %v2522_v41 }
0x134c   : > { %2523 = vrcp.f32 %v1886_v42  ;;  %v1898_v48 = vand.u32 2147483648, %v1886_v42  ;;  %vm1892_vm11 = vweird.f32 %v1886_v42  ;;  %v1896_v49 = vand.u32 2147483647, %v1886_v42 }
0x134e   : > { %v1899_v51 = vor.u32 1.1754944e-38, %v1898_v48  ;;  %vm1897_vm13 = vcmp.eq.f32.partialorder %v1896_v49, 8.507059e+37 }
0x1352   : > { %v2524_v43 = vpop.eup %2523 }
0x1353   : > { %v1888_v44 = vmul.f32 %v2524_v43, %v1886_v42  ;;  %vm1893_vm10 = vweird.f32 %v2524_v43 }
0x1354   : > { %vm1894_vm12 = vmor %vm1892_vm11, %vm1893_vm10 }
0x1355   : > { %v1889_v45 = vsub.f32 1.0, %v1888_v44 }
0x1357   : > { %v1890_v46 = vmul.f32 %v2524_v43, %v1889_v45 }
0x1359   : > { %v1891_v47 = vadd.f32 %v2524_v43, %v1890_v46 }
0x135b   : > { %v1895_v50 = vsel %vm1894_vm12, %v2524_v43, %v1891_v47 }
0x135c   : > { %v1900_v53 = vsel %vm1897_vm13, %v1899_v51, %v1895_v50 }
0x135d   : > { %v1903_v55 = vmul.f32 %v1900_v53, %v3343_v14 }
0x13ba   : > { %v1906_v52 = vpop.permute.xlu1 %1905 }
0x13bb   : > { %v1908_v54 = vmul.f32 %v1906_v52, %v1900_v53 }
0x13bd   : > { %1910 = vrot.lane.b32.xlu2 %v1908_v54, %s3473_s30 }
0x13c5   : > { %1928 = vrot.lane.b32.xlu2 %v3339_v21, %s2728_s28 }
0x1417   : > { %v1911_v56 = vpop.permute.xlu2 %1910 }
0x1418   : > { %v1913_v57 = vadd.f32 %v1911_v56, %v1903_v55 }
0x141a   : > { %2525 = vtanh.f32 %v1913_v57 }
0x141f   : > { %v1929_v5 = vpop.permute.xlu2 %1928 }
0x1420   : > { %v2526_v6 = vpop.eup %2525  ;;  %1931 = vst.msk [vmem:[#allocation12] sm:$0xff] %vm596_vm1, %v1929_v5 }
0x1421   : > { %1916 = vrot.lane.b32.xlu0 %v2526_v6, %s3472_s23  ;;  %s2729_s23 = smov [#allocation10]  }
0x1422   : > { %s2054_s29 = sshll.u32 %s2729_s23, 4  ;;  %s2055_s29 = int_to_ptr.vmem [resolvable:$true] %s2054_s29 }
0x1429   : > { %1934 = vrot.lane.b32.xlu0 %v1913_v57, %s2728_s28  ;;  %s2732_s28 = smov [#allocation12]  }
0x142a   : > { %s2068_s23 = sshll.u32 %s2732_s28, 4  ;;  %s2069_s23 = int_to_ptr.vmem [resolvable:$true] %s2068_s23 }
0x1493   : > { %v1917_v7 = vpop.permute.xlu0 %1916 }
0x1494   : > { %v1919_v13 = vmul.f32 %v1917_v7, %v1900_v53 }
0x1496   : > { %1921 = vrot.lane.b32.xlu1 %v1919_v13, %s3473_s30  ;;  %s2056_s30 = sshll.u32 %s3450_s11, 4  ;;  %s2057_s30 = int_to_ptr.hbm [resolvable:$true] %s2056_s30 }
0x149b   : > { %v1935_v15 = vpop.permute.xlu0 %1934 }
0x149c   : > { %1937 = vst.msk [vmem:[#allocation12 + $0x8] sm:$0xff] %vm596_vm1, %v1935_v15 }
0x1508   : > { %v1922_v18 = vpop.permute.xlu1 %1921 }
0x1509   : > { %1924 = vst.msk [vmem:[#allocation3 + $0x38] sm:$0xff] %vm596_vm1, %v1922_v18 }
0x150a   : > { %1932 = vst.msk [vmem:[#allocation10 + $0x8] sm:$0xff] %vm596_vm1, %v1922_v18 }
0x150b   : > { %2314 = dma.vmem_to_hbm [thread:$0]  (%p262_p2), %s2055_s29, 256, %s2057_s30, [#allocation11], %s2730_s19, %s2730_s19, %s2731_s18  }
0x150c   : > { %2316 = dma.vmem_to_hbm [thread:$0]  (%p262_p2), %s2069_s23, 256, %s2071_s16, [#allocation11], %s2730_s19, %s2730_s19, %s2731_s18  }
0x150d   : > { %s2039_s29 = scalar_lea.hbm %s3449_s10, %s2295_s15  ;;  %s2040_s30 = sshll.u32 %s2883_s20, 4  ;;  %s2041_s30 = int_to_ptr.vmem [resolvable:$true] %s2040_s30 }
0x150e   : > { %s2042_s1 = sshll.u32 %s2039_s29, 4  ;;  %s2664_s23 = scalar_lea.hbm %s3449_s10, 256  ;;  %s2043_s1 = int_to_ptr.hbm [resolvable:$true] %s2042_s1 }
0x150f   : > { %s2658_s28 = sshra.s32 %s2043_s1, 4  ;;  %s2659_s28 = int_to_ptr.hbm [resolvable:$true] %s2658_s28 }
0x1510   : > { %v1945_v58 = vld [vmem:[#allocation3 + $0x38] sm:$0xff]  ;;  %s2660_s2 = scalar_lea.hbm %s2659_s28, 64  ;;  %p2665_p7 = scmp.lt.s32.totalorder %s2659_s28, %s3449_s10 }
0x1511   : > { %2285 = vmatmul.msk.f32.gmra.mxu3 %vm596_vm1, %v1945_v58  ;;  %p2661_p1 = scmp.ne.s32.totalorder %s2659_s28, %s2660_s2  ;;  %p2666_p8 = scmp.lt.s32.totalorder %s2664_s23, %s2660_s2 }
0x1513   : > { %p2662_p3 = pnand %p2661_p1, %p2838_p5  ;;  %p2667_p9 = por %p2666_p8, %p2665_p7 }
0x1515   : > { %p2663_p4 = pneg %p2662_p3 }
0x1517   : > { %p2668_p10 = pnand %p2667_p9, %p2663_p4 }
0x1594   : > { %v2016_v16 = vpop.f32.mrf.mxu3 }
0x1595   : > { %v2017_v22 = vadd.f32 %v3326_v1, %v2016_v16 }
0x1597   : > { %2026 = vst [vmem:[%s2883_s20 + $0x38] sm:$0xff] %v2017_v22 }
0x1598   : > { %2671 = shalt.err (!%p2668_p10)
}
0x1599   : > { %2312 = dma.vmem_to_hbm [thread:$0]  (%p2838_p5), %s2041_s30, 1024, %s2043_s1, %s2028_s27, %s2730_s19, %s2730_s19, %s2731_s18  }
0x159a   : > { %2697 = dma.done.wait (%p262_p2), [#allocation11], 512  }
0x159b   : > { %2699 = vsyncadd (%p262_p2), [#allocation11], 4294966784 }
0x159c PF: > { %p2341_p11 = scmp.ge.s32.totalorder %s2718_s24, 2  ;;  %s2095_s2 = sand.u32 1, %s2706_s21  }
0x159d   : > { %s2096_s13 = scalar_lea.sflag [#allocation6], %s2095_s2 }
0x159e   : > { %p2330_p12 = pnand %p2341_p11, %p2842_p6 }
0x15a0   : > { %p2331_p13 = pneg %p2330_p12 }
0x15a2   : > { %2701 = dma.done.wait (%p2331_p13), %s2096_s13, 1024  }
0x15a3   : > { %2703 = vsyncadd (%p2331_p13), %s2096_s13, 4294966272  ;;  %s3475_s24 = sld [smem:[#allocation18_spill]]  ;;  %s3478_s21 = smov %s2710_s22 }
0x15a4   : > { %s3476_s1 = sld [smem:[#allocation17_spill]] }
0x15a5   : > { %s3477_s23 = sld [smem:[#allocation19_spill]] }
0x15a9   : > { %p26_p5 = scmp.ge.s32.totalorder %s3475_s24, 6  }
0x15aa   : > { %s3479_s22 = smov %s3476_s1 }
0x15ab   :  { %28 = sbr.rel (!%p26_p5) target bundleno = 10 (0xa), region = 127 }
0x15b0   :  { %2102 = vsyncpa [#allocation5], 1 }
0x15b1   :  { %2104 = vsyncpa [#allocation5 + $0x1], 1 }
0x15b2   :  { %2105 = vsyncpa [#allocation8], 1 }
0x15b3   :  { %2106 = vsyncpa [#allocation6], 1 }
0x15b4   :  { %2108 = vsyncpa [#allocation6 + $0x1], 1 }
0x15b5   :  { %2109 = vsyncpa [#allocation11], 1 }

</bundles_post_ra>
